<compile_context>
chip_gen: v7x
topology: tpu7x:2x2x1
jax: 0.10.0
libtpu: 0.0.40
codegen_flags: <defaults>
</compile_context>

<pallas_src>
import math

import jax
import jax.numpy as jnp
from jax import lax
from jax.experimental import pallas as pl
from jax.experimental.pallas import tpu as pltpu

B0 = 0.01    # baseline threshold (b0_value)
R_M = 1.0    # membrane resistance
BETA = 1.8   # adaptation scaling
DT = 1.0     # time step


# ---------------------------------------------------------------------------
# Stage 1: time-invariant input projection (hoisted out of the recurrent loop)
# ---------------------------------------------------------------------------
def _input_proj_kernel(x_ref, w_ref, bias_ref, o_ref):
    o_ref[...] = (
        jnp.dot(x_ref[...], w_ref[...], preferred_element_type=jnp.float32)
        + bias_ref[...]
    )


def _pick_m_tile(m):
    if m % 8 != 0:
        return m
    for cand in (512, 256, 128, 64, 32, 16, 8):
        if m % cand == 0:
            return cand
    return m


def _input_projection(x_seq, w_in, bias):
    """proj[t,b,:] = x[t,b,:] @ W_in + (b_in + b_rec), computed as one big
    (T*B, D_in) x (D_in, D_out) matmul at full MXU occupancy."""
    seq_len, batch, d_in = x_seq.shape
    d_out = w_in.shape[1]
    m = seq_len * batch
    tm = _pick_m_tile(m)
    # Binary input spikes are exactly representable in bf16 -> bf16 MXU
    # operands with f32 accumulation (exact for 0/1 inputs).
    x2d = x_seq.reshape(m, d_in).astype(jnp.bfloat16)
    proj = pl.pallas_call(
        _input_proj_kernel,
        out_shape=jax.ShapeDtypeStruct((m, d_out), jnp.float32),
        grid_spec=pltpu.PrefetchScalarGridSpec(
            num_scalar_prefetch=0,
            grid=(m // tm,),
            in_specs=[
                pl.BlockSpec((tm, d_in), lambda i: (i, 0)),
                pl.BlockSpec((d_in, d_out), lambda i: (0, 0)),   # resident
                pl.BlockSpec((1, d_out), lambda i: (0, 0)),      # resident
            ],
            out_specs=pl.BlockSpec((tm, d_out), lambda i: (i, 0)),
        ),
        compiler_params=pltpu.CompilerParams(
            dimension_semantics=("parallel",),
        ),
    )(x2d, w_in, bias)
    return proj.reshape(seq_len, batch, d_out)


# ---------------------------------------------------------------------------
# Stage 2: fused recurrent ALIF loop (time-chunked)
# ---------------------------------------------------------------------------
def _alif_recurrent_kernel(
    proj_ref,       # (T_CHUNK, block_b, D_out)  precomputed input projection
    state0_ref,     # (3, block_b, D_out)        initial [mem, spike, b]
    w_rec_ref,      # (D_out, D_out) bf16        recurrent weights (resident)
    decay_ref,      # (4, 1, D_out)              [alpha, (1-alpha)*R_m, rho, 1-rho]
    mem_seq_ref,    # (T_CHUNK, block_b, D_out)  per-step membrane output
    spike_seq_ref,  # (T_CHUNK, block_b, D_out)  per-step spike output
    state_ref,      # (3, block_b, D_out)        final state OUTPUT == carried state
):
    # NOTE: correctness relies on the time-chunk axis being the LAST grid axis
    # and iterated sequentially ("arbitrary"); state_ref's index map is
    # constant along it so its block stays resident in VMEM (accumulator
    # pattern) and carries the recurrence across chunks.
    tc = pl.program_id(1)

    @pl.when(tc == 0)
    def _():
        state_ref[...] = state0_ref[...]

    # Chunk-invariant values: loaded once, reused by every unrolled step.
    alpha = decay_ref[0]       # (1, D_out) broadcasts over batch
    om_alpha = decay_ref[1]    # (1 - alpha) * R_m
    rho = decay_ref[2]
    om_rho = decay_ref[3]      # (1 - rho)
    w_rec = w_rec_ref[...]     # bf16

    n_steps = proj_ref.shape[0]   # static T_CHUNK

    def step(i, carry):
        mem, spike, b = carry
        # d_input = x_t @ W_in + b_in + spike_{t-1} @ W_rec + b_rec
        #           = proj[t] + spike_{t-1} @ W_rec
        d_input = proj_ref[i] + jnp.dot(
            spike.astype(jnp.bfloat16), w_rec,
            preferred_element_type=jnp.float32,
        )
        b_new = rho * b + om_rho * spike
        theta = B0 + BETA * b_new
        mem_new = alpha * mem + om_alpha * d_input - theta * spike * DT
        spike_new = (mem_new - theta > 0.0).astype(jnp.float32)
        mem_seq_ref[i] = mem_new
        spike_seq_ref[i] = spike_new
        return mem_new, spike_new, b_new

    mem, spike, b = lax.fori_loop(
        0, n_steps, step,
        (state_ref[0], state_ref[1], state_ref[2]),
        unroll=n_steps <= 16,
    )

    # Carry for the next time chunk; also the packed final-state output.
    state_ref[0] = mem
    state_ref[1] = spike
    state_ref[2] = b


def _pick_batch_block(batch):
    """Largest MXU-friendly batch tile (<=256 rows) that divides the batch.
    Big tiles maximize MXU occupancy on v5e/v6e (single TC); when the batch is
    large this still yields >=2 tiles for the 'parallel' axis on v7x."""
    if batch % 8 != 0:
        return batch
    for cand in (256, 128, 64, 32, 16, 8):
        if batch % cand == 0:
            return cand
    return batch


def _pick_time_chunk(seq_len, block_b, d_out, budget_bytes=16 * 1024 * 1024):
    """Largest divisor of seq_len (<=32) whose double-buffered proj/mem/spike
    chunk blocks fit in a modest VMEM budget."""
    per_step = 3 * block_b * d_out * 4 * 2
    max_chunk = max(1, min(32, budget_bytes // max(per_step, 1)))
    best = 1
    for c in range(1, min(seq_len, max_chunk) + 1):
        if seq_len % c == 0:
            best = c
    return best


def spike_rnn_alif_forward(x_seq, state0, params):
    """Run the ALIF recurrent layer over a full sequence.

    x_seq : [T, B, D_in]  float32 input spikes
    state0: [3, B, D_out] packed [mem, spike, b] initial state
    params: (w_in [D_in, D_out] bf16, w_rec [D_out, D_out] bf16,
             bias [1, D_out] f32, decay [4, 1, D_out] f32)

    Returns (mem_seq [T,B,D_out], spike_seq [T,B,D_out], state_final [3,B,D_out]).
    """
    w_in, w_rec, bias, decay = params
    seq_len, batch, d_in = x_seq.shape
    d_out = w_rec.shape[0]

    # Stage 1: batched input projection (full-roofline matmul, done once).
    proj_seq = _input_projection(x_seq, w_in, bias)

    # Stage 2: fused time-chunked recurrence.
    block_b = _pick_batch_block(batch)
    n_bt = batch // block_b
    t_chunk = _pick_time_chunk(seq_len, block_b, d_out)
    n_tc = seq_len // t_chunk

    mem_seq, spike_seq, state_final = pl.pallas_call(
        _alif_recurrent_kernel,
        out_shape=(
            jax.ShapeDtypeStruct((seq_len, batch, d_out), jnp.float32),
            jax.ShapeDtypeStruct((seq_len, batch, d_out), jnp.float32),
            jax.ShapeDtypeStruct((3, batch, d_out), jnp.float32),
        ),
        grid_spec=pltpu.PrefetchScalarGridSpec(
            num_scalar_prefetch=0,
            grid=(n_bt, n_tc),
            in_specs=[
                # projection: a fresh T_CHUNK slab per grid step (pipelined)
                pl.BlockSpec((t_chunk, block_b, d_out), lambda bt, tc: (tc, bt, 0)),
                # initial state: constant per batch tile (resident)
                pl.BlockSpec((3, block_b, d_out), lambda bt, tc: (0, bt, 0)),
                # recurrent weights / decay constants: resident across grid
                pl.BlockSpec((d_out, d_out), lambda bt, tc: (0, 0)),
                pl.BlockSpec((4, 1, d_out), lambda bt, tc: (0, 0, 0)),
            ],
            out_specs=(
                pl.BlockSpec((t_chunk, block_b, d_out), lambda bt, tc: (tc, bt, 0)),
                pl.BlockSpec((t_chunk, block_b, d_out), lambda bt, tc: (tc, bt, 0)),
                # final state: resident across time -> serves as the carry
                pl.BlockSpec((3, block_b, d_out), lambda bt, tc: (0, bt, 0)),
            ),
        ),
        compiler_params=pltpu.CompilerParams(
            dimension_semantics=("parallel", "arbitrary"),
        ),
        # state0 and the final-state output share a buffer (no extra copy).
        input_output_aliases={1: 2},
    )(proj_seq, state0, w_rec, decay)
    return mem_seq, spike_seq, state_final


# ---------------------------------------------------------------------------
# Host-side parameter handling
# ---------------------------------------------------------------------------
def init_params(key, input_dim, output_dim):
    """Matches the PyTorch __init__: nn.Linear default init + normal tau init."""
    ks = jax.random.split(key, 6)
    lim_in = 1.0 / math.sqrt(input_dim)
    lim_rec = 1.0 / math.sqrt(output_dim)
    w_in = jax.random.uniform(ks[0], (input_dim, output_dim), jnp.float32,
                              -lim_in, lim_in)
    b_in = jax.random.uniform(ks[1], (output_dim,), jnp.float32, -lim_in, lim_in)
    w_rec = jax.random.uniform(ks[2], (output_dim, output_dim), jnp.float32,
                               -lim_rec, lim_rec)
    b_rec = jax.random.uniform(ks[3], (output_dim,), jnp.float32, -lim_rec, lim_rec)
    # tau_m ~ N(20, 5), tau_adp ~ N(100, 5); clamp to keep exp(-dt/tau) sane.
    tau_m = jnp.maximum(20.0 + 5.0 * jax.random.normal(ks[4], (output_dim,)), 1.0)
    tau_adp = jnp.maximum(100.0 + 5.0 * jax.random.normal(ks[5], (output_dim,)), 1.0)
    return w_in, b_in, w_rec, b_rec, tau_m, tau_adp


def pack_params(w_in, b_in, w_rec, b_rec, tau_m, tau_adp):
    """Host-side preprocessing: bf16 weights (MXU operands), fused bias, and
    precomputed decay constants [alpha, (1-alpha)*R_m, rho, (1-rho)]."""
    d_out = w_rec.shape[0]
    bias = (b_in + b_rec).reshape(1, d_out).astype(jnp.float32)
    alpha = jnp.exp(-DT / tau_m)
    rho = jnp.exp(-DT / tau_adp)
    decay = jnp.stack(
        [alpha, (1.0 - alpha) * R_M, rho, (1.0 - rho)], axis=0
    ).reshape(4, 1, d_out).astype(jnp.float32)
    # TODO(synk): bf16 weights trade a few mantissa bits vs the f32 PyTorch
    #             reference; accumulation stays f32 (spikes/inputs are exact).
    return (w_in.astype(jnp.bfloat16), w_rec.astype(jnp.bfloat16), bias, decay)


def set_neuron_state(batch_size, output_dim):
    """Mirrors spike_rnn_alif.set_neuron_state, packed as [mem, spike, b]."""
    mem = jnp.zeros((1, batch_size, output_dim), jnp.float32)
    spike = jnp.zeros((1, batch_size, output_dim), jnp.float32)
    b = jnp.full((1, batch_size, output_dim), B0, jnp.float32)
    return jnp.concatenate([mem, spike, b], axis=0)             # (3, B, D_out)


if __name__ == "__main__":
    batch, input_dim, output_dim, seq_len = 8, 128, 128, 16

    key = jax.random.PRNGKey(0)
    k_param, k_x = jax.random.split(key)
    raw_params = init_params(k_param, input_dim, output_dim)
    params = pack_params(*raw_params)
    state0 = set_neuron_state(batch, output_dim)

    # binary input spikes over the sequence: [T, B, D_in]
    x_seq = (jax.random.uniform(k_x, (seq_len, batch, input_dim)) < 0.3).astype(
        jnp.float32
    )

    fwd = jax.jit(spike_rnn_alif_forward)
    mem_seq, spike_seq, state_final = fwd(x_seq, state0, params)
    jax.block_until_ready((mem_seq, spike_seq, state_final))

    assert mem_seq.shape == (seq_len, batch, output_dim)
    assert spike_seq.shape == (seq_len, batch, output_dim)
    assert state_final.shape == (3, batch, output_dim)
    assert bool(jnp.all(jnp.isfinite(mem_seq)))
    assert bool(jnp.all((spike_seq == 0.0) | (spike_seq == 1.0)))
    # The packed final state must match the last timestep of the streamed outputs.
    assert bool(jnp.array_equal(state_final[0], mem_seq[-1]))
    assert bool(jnp.array_equal(state_final[1], spike_seq[-1]))

    print("KERNEL_OK")
</pallas_src>

<mosaic_0001>
module attributes {stable_mosaic.version = 11 : i64} {
  func.func @_input_proj_kernel(%arg0: i32, %arg1: memref<128x128xbf16, #tpu.memory_space<vmem>>, %arg2: memref<128x128xbf16, #tpu.memory_space<vmem>>, %arg3: memref<1x128xf32, #tpu.memory_space<vmem>>, %arg4: memref<128x128xf32, #tpu.memory_space<vmem>>) attributes {dimension_semantics = [#tpu.dimension_semantics<parallel>], iteration_bounds = array<i64: 1>, scalar_prefetch = 0 : i64, scratch_operands = 0 : i64, tpu.core_type = #tpu.core_type<tc>, window_params = [{transform_indices = @transform_0, window_bounds = array<i64: 128, 128>}, {pipeline_mode = #tpu.pipeline_mode<synchronous>, transform_indices = @transform_1, window_bounds = array<i64: 128, 128>}, {pipeline_mode = #tpu.pipeline_mode<synchronous>, transform_indices = @transform_2, window_bounds = array<i64: 1, 128>}, {transform_indices = @transform_3, window_bounds = array<i64: 128, 128>}]} {
    %c0 = arith.constant 0 : index
    %c0_0 = arith.constant 0 : index
    %0 = vector.load %arg1[%c0, %c0_0] : memref<128x128xbf16, #tpu.memory_space<vmem>>, vector<128x128xbf16>
    %c0_1 = arith.constant 0 : index
    %c0_2 = arith.constant 0 : index
    %1 = vector.load %arg2[%c0_1, %c0_2] : memref<128x128xbf16, #tpu.memory_space<vmem>>, vector<128x128xbf16>
    %cst = arith.constant dense<0.000000e+00> : vector<128x128xf32>
    %2 = tpu.matmul %0, %1, %cst {dimension_numbers = #tpu.dot_dimension_numbers<[1], [0], [0], [1], [0, 0, 1, 1], [], []>} : vector<128x128xbf16>, vector<128x128xbf16>, vector<128x128xf32> -> vector<128x128xf32>
    %c0_3 = arith.constant 0 : index
    %c0_4 = arith.constant 0 : index
    %3 = vector.load %arg3[%c0_3, %c0_4] : memref<1x128xf32, #tpu.memory_space<vmem>>, vector<1x128xf32>
    %4 = vector.broadcast %3 : vector<1x128xf32> to vector<128x128xf32>
    %5 = arith.addf %2, %4 : vector<128x128xf32>
    %c0_5 = arith.constant 0 : index
    %c0_6 = arith.constant 0 : index
    %6 = vector.load %arg4[%c0_5, %c0_6] : memref<128x128xf32, #tpu.memory_space<vmem>>, vector<128x128xf32>
    tpu.vector_store %arg4[%c0_5, %c0_6], %5 {strides = array<i32>} : memref<128x128xf32, #tpu.memory_space<vmem>>, vector<128x128xf32>,
    return
  }
  func.func @transform_0(%arg0: i32) -> (i32, i32) {
    %c0_i32 = arith.constant 0 : i32
    %c0_i32_0 = arith.constant 0 : i32
    return %arg0, %c0_i32 : i32, i32
  }
  func.func @transform_1(%arg0: i32) -> (i32, i32) {
    %c0_i32 = arith.constant 0 : i32
    %c0_i32_0 = arith.constant 0 : i32
    %c0_i32_1 = arith.constant 0 : i32
    return %c0_i32, %c0_i32_0 : i32, i32
  }
  func.func @transform_2(%arg0: i32) -> (i32, i32) {
    %c0_i32 = arith.constant 0 : i32
    %c0_i32_0 = arith.constant 0 : i32
    %c0_i32_1 = arith.constant 0 : i32
    return %c0_i32, %c0_i32_0 : i32, i32
  }
  func.func @transform_3(%arg0: i32) -> (i32, i32) {
    %c0_i32 = arith.constant 0 : i32
    %c0_i32_0 = arith.constant 0 : i32
    return %arg0, %c0_i32 : i32, i32
  }
}

module attributes {stable_mosaic.version = 11 : i64} {
  func.func @_alif_recurrent_kernel(%arg0: i32, %arg1: i32, %arg2: memref<16x8x128xf32, #tpu.memory_space<vmem>>, %arg3: memref<3x8x128xf32, #tpu.memory_space<vmem>>, %arg4: memref<128x128xbf16, #tpu.memory_space<vmem>>, %arg5: memref<4x1x128xf32, #tpu.memory_space<vmem>>, %arg6: memref<16x8x128xf32, #tpu.memory_space<vmem>>, %arg7: memref<16x8x128xf32, #tpu.memory_space<vmem>>, %arg8: memref<3x8x128xf32, #tpu.memory_space<vmem>>) attributes {dimension_semantics = [#tpu.dimension_semantics<parallel>, #tpu.dimension_semantics<arbitrary>], iteration_bounds = array<i64: 1, 1>, scalar_prefetch = 0 : i64, scratch_operands = 0 : i64, tpu.core_type = #tpu.core_type<tc>, window_params = [{transform_indices = @transform_0, window_bounds = array<i64: 16, 8, 128>}, {transform_indices = @transform_1, window_bounds = array<i64: 3, 8, 128>}, {pipeline_mode = #tpu.pipeline_mode<synchronous>, transform_indices = @transform_2, window_bounds = array<i64: 128, 128>}, {pipeline_mode = #tpu.pipeline_mode<synchronous>, transform_indices = @transform_3, window_bounds = array<i64: 4, 1, 128>}, {transform_indices = @transform_4, window_bounds = array<i64: 16, 8, 128>}, {transform_indices = @transform_5, window_bounds = array<i64: 16, 8, 128>}, {transform_indices = @transform_6, window_bounds = array<i64: 3, 8, 128>}]} {
    %c0_i32 = arith.constant 0 : i32
    %0 = arith.cmpi eq, %arg1, %c0_i32 : i32
    %1 = arith.extui %0 : i1 to i32
    %c0_i32_0 = arith.constant 0 : i32
    %2 = arith.cmpi ne, %1, %c0_i32_0 : i32
    scf.if %2 {
      %c0_205 = arith.constant 0 : index
      %c0_206 = arith.constant 0 : index
      %c0_207 = arith.constant 0 : index
      %619 = vector.load %arg3[%c0_205, %c0_206, %c0_207] : memref<3x8x128xf32, #tpu.memory_space<vmem>>, vector<3x8x128xf32>
      %c0_208 = arith.constant 0 : index
      %c0_209 = arith.constant 0 : index
      %c0_210 = arith.constant 0 : index
      %620 = vector.load %arg8[%c0_208, %c0_209, %c0_210] : memref<3x8x128xf32, #tpu.memory_space<vmem>>, vector<3x8x128xf32>
      tpu.vector_store %arg8[%c0_208, %c0_209, %c0_210], %619 {strides = array<i32>} : memref<3x8x128xf32, #tpu.memory_space<vmem>>, vector<3x8x128xf32>,
    } else {
    }
    %c0 = arith.constant 0 : index
    %c0_1 = arith.constant 0 : index
    %c0_2 = arith.constant 0 : index
    %3 = vector.load %arg5[%c0, %c0_1, %c0_2] : memref<4x1x128xf32, #tpu.memory_space<vmem>>, vector<1x1x128xf32>
    %4 = vector.shape_cast %3 : vector<1x1x128xf32> to vector<1x128xf32>
    %c1 = arith.constant 1 : index
    %c0_3 = arith.constant 0 : index
    %c0_4 = arith.constant 0 : index
    %5 = vector.load %arg5[%c1, %c0_3, %c0_4] : memref<4x1x128xf32, #tpu.memory_space<vmem>>, vector<1x1x128xf32>
    %6 = vector.shape_cast %5 : vector<1x1x128xf32> to vector<1x128xf32>
    %c2 = arith.constant 2 : index
    %c0_5 = arith.constant 0 : index
    %c0_6 = arith.constant 0 : index
    %7 = vector.load %arg5[%c2, %c0_5, %c0_6] : memref<4x1x128xf32, #tpu.memory_space<vmem>>, vector<1x1x128xf32>
    %8 = vector.shape_cast %7 : vector<1x1x128xf32> to vector<1x128xf32>
    %c3 = arith.constant 3 : index
    %c0_7 = arith.constant 0 : index
    %c0_8 = arith.constant 0 : index
    %9 = vector.load %arg5[%c3, %c0_7, %c0_8] : memref<4x1x128xf32, #tpu.memory_space<vmem>>, vector<1x1x128xf32>
    %10 = vector.shape_cast %9 : vector<1x1x128xf32> to vector<1x128xf32>
    %c0_9 = arith.constant 0 : index
    %c0_10 = arith.constant 0 : index
    %11 = vector.load %arg4[%c0_9, %c0_10] : memref<128x128xbf16, #tpu.memory_space<vmem>>, vector<128x128xbf16>
    %c0_11 = arith.constant 0 : index
    %c0_12 = arith.constant 0 : index
    %c0_13 = arith.constant 0 : index
    %12 = vector.load %arg8[%c0_11, %c0_12, %c0_13] : memref<3x8x128xf32, #tpu.memory_space<vmem>>, vector<1x8x128xf32>
    %13 = vector.shape_cast %12 : vector<1x8x128xf32> to vector<8x128xf32>
    %c1_14 = arith.constant 1 : index
    %c0_15 = arith.constant 0 : index
    %c0_16 = arith.constant 0 : index
    %14 = vector.load %arg8[%c1_14, %c0_15, %c0_16] : memref<3x8x128xf32, #tpu.memory_space<vmem>>, vector<1x8x128xf32>
    %15 = vector.shape_cast %14 : vector<1x8x128xf32> to vector<8x128xf32>
    %c2_17 = arith.constant 2 : index
    %c0_18 = arith.constant 0 : index
    %c0_19 = arith.constant 0 : index
    %16 = vector.load %arg8[%c2_17, %c0_18, %c0_19] : memref<3x8x128xf32, #tpu.memory_space<vmem>>, vector<1x8x128xf32>
    %17 = vector.shape_cast %16 : vector<1x8x128xf32> to vector<8x128xf32>
    %c0_i32_20 = arith.constant 0 : i32
    %18 = arith.index_cast %c0_i32_20 : i32 to index
    %c0_21 = arith.constant 0 : index
    %c0_22 = arith.constant 0 : index
    %19 = vector.load %arg2[%18, %c0_21, %c0_22] : memref<16x8x128xf32, #tpu.memory_space<vmem>>, vector<1x8x128xf32>
    %20 = vector.shape_cast %19 : vector<1x8x128xf32> to vector<8x128xf32>
    %21 = arith.truncf %15 : vector<8x128xf32> to vector<8x128xbf16>
    %cst = arith.constant dense<0.000000e+00> : vector<8x128xf32>
    %22 = tpu.matmul %21, %11, %cst {dimension_numbers = #tpu.dot_dimension_numbers<[1], [0], [0], [1], [0, 0, 1, 1], [], []>} : vector<8x128xbf16>, vector<128x128xbf16>, vector<8x128xf32> -> vector<8x128xf32>
    %23 = arith.addf %20, %22 : vector<8x128xf32>
    %24 = vector.broadcast %8 : vector<1x128xf32> to vector<8x128xf32>
    %25 = arith.mulf %24, %17 : vector<8x128xf32>
    %26 = vector.broadcast %10 : vector<1x128xf32> to vector<8x128xf32>
    %27 = arith.mulf %26, %15 : vector<8x128xf32>
    %28 = arith.addf %25, %27 : vector<8x128xf32>
    %cst_23 = arith.constant 1.800000e+00 : f32
    %29 = vector.broadcast %cst_23 : f32 to vector<8x128xf32>
    %30 = arith.mulf %29, %28 : vector<8x128xf32>
    %cst_24 = arith.constant 0.00999999977 : f32
    %31 = vector.broadcast %cst_24 : f32 to vector<8x128xf32>
    %32 = arith.addf %31, %30 : vector<8x128xf32>
    %33 = vector.broadcast %4 : vector<1x128xf32> to vector<8x128xf32>
    %34 = arith.mulf %33, %13 : vector<8x128xf32>
    %35 = vector.broadcast %6 : vector<1x128xf32> to vector<8x128xf32>
    %36 = arith.mulf %35, %23 : vector<8x128xf32>
    %37 = arith.addf %34, %36 : vector<8x128xf32>
    %38 = arith.mulf %32, %15 : vector<8x128xf32>
    %cst_25 = arith.constant 1.000000e+00 : f32
    %39 = vector.broadcast %cst_25 : f32 to vector<8x128xf32>
    %40 = arith.mulf %38, %39 : vector<8x128xf32>
    %41 = arith.subf %37, %40 : vector<8x128xf32>
    %42 = arith.subf %41, %32 : vector<8x128xf32>
    %cst_26 = arith.constant 0.000000e+00 : f32
    %43 = vector.broadcast %cst_26 : f32 to vector<8x128xf32>
    %44 = arith.cmpf ogt, %42, %43 : vector<8x128xf32>
    %45 = arith.extui %44 : vector<8x128xi1> to vector<8x128xi32>
    %46 = arith.sitofp %45 : vector<8x128xi32> to vector<8x128xf32>
    %47 = arith.index_cast %c0_i32_20 : i32 to index
    %c0_27 = arith.constant 0 : index
    %c0_28 = arith.constant 0 : index
    %48 = vector.load %arg6[%47, %c0_27, %c0_28] : memref<16x8x128xf32, #tpu.memory_space<vmem>>, vector<1x8x128xf32>
    %49 = vector.shape_cast %48 : vector<1x8x128xf32> to vector<8x128xf32>
    %50 = vector.shape_cast %41 : vector<8x128xf32> to vector<1x8x128xf32>
    tpu.vector_store %arg6[%47, %c0_27, %c0_28], %50 {strides = array<i32>} : memref<16x8x128xf32, #tpu.memory_space<vmem>>, vector<1x8x128xf32>,
    %51 = arith.index_cast %c0_i32_20 : i32 to index
    %c0_29 = arith.constant 0 : index
    %c0_30 = arith.constant 0 : index
    %52 = vector.load %arg7[%51, %c0_29, %c0_30] : memref<16x8x128xf32, #tpu.memory_space<vmem>>, vector<1x8x128xf32>
    %53 = vector.shape_cast %52 : vector<1x8x128xf32> to vector<8x128xf32>
    %54 = vector.shape_cast %46 : vector<8x128xf32> to vector<1x8x128xf32>
    tpu.vector_store %arg7[%51, %c0_29, %c0_30], %54 {strides = array<i32>} : memref<16x8x128xf32, #tpu.memory_space<vmem>>, vector<1x8x128xf32>,
    %c1_i32 = arith.constant 1 : i32
    %55 = arith.index_cast %c1_i32 : i32 to index
    %c0_31 = arith.constant 0 : index
    %c0_32 = arith.constant 0 : index
    %56 = vector.load %arg2[%55, %c0_31, %c0_32] : memref<16x8x128xf32, #tpu.memory_space<vmem>>, vector<1x8x128xf32>
    %57 = vector.shape_cast %56 : vector<1x8x128xf32> to vector<8x128xf32>
    %58 = arith.truncf %46 : vector<8x128xf32> to vector<8x128xbf16>
    %cst_33 = arith.constant dense<0.000000e+00> : vector<8x128xf32>
    %59 = tpu.matmul %58, %11, %cst_33 {dimension_numbers = #tpu.dot_dimension_numbers<[1], [0], [0], [1], [0, 0, 1, 1], [], []>} : vector<8x128xbf16>, vector<128x128xbf16>, vector<8x128xf32> -> vector<8x128xf32>
    %60 = arith.addf %57, %59 : vector<8x128xf32>
    %61 = vector.broadcast %8 : vector<1x128xf32> to vector<8x128xf32>
    %62 = arith.mulf %61, %28 : vector<8x128xf32>
    %63 = vector.broadcast %10 : vector<1x128xf32> to vector<8x128xf32>
    %64 = arith.mulf %63, %46 : vector<8x128xf32>
    %65 = arith.addf %62, %64 : vector<8x128xf32>
    %cst_34 = arith.constant 1.800000e+00 : f32
    %66 = vector.broadcast %cst_34 : f32 to vector<8x128xf32>
    %67 = arith.mulf %66, %65 : vector<8x128xf32>
    %cst_35 = arith.constant 0.00999999977 : f32
    %68 = vector.broadcast %cst_35 : f32 to vector<8x128xf32>
    %69 = arith.addf %68, %67 : vector<8x128xf32>
    %70 = vector.broadcast %4 : vector<1x128xf32> to vector<8x128xf32>
    %71 = arith.mulf %70, %41 : vector<8x128xf32>
    %72 = vector.broadcast %6 : vector<1x128xf32> to vector<8x128xf32>
    %73 = arith.mulf %72, %60 : vector<8x128xf32>
    %74 = arith.addf %71, %73 : vector<8x128xf32>
    %75 = arith.mulf %69, %46 : vector<8x128xf32>
    %cst_36 = arith.constant 1.000000e+00 : f32
    %76 = vector.broadcast %cst_36 : f32 to vector<8x128xf32>
    %77 = arith.mulf %75, %76 : vector<8x128xf32>
    %78 = arith.subf %74, %77 : vector<8x128xf32>
    %79 = arith.subf %78, %69 : vector<8x128xf32>
    %cst_37 = arith.constant 0.000000e+00 : f32
    %80 = vector.broadcast %cst_37 : f32 to vector<8x128xf32>
    %81 = arith.cmpf ogt, %79, %80 : vector<8x128xf32>
    %82 = arith.extui %81 : vector<8x128xi1> to vector<8x128xi32>
    %83 = arith.sitofp %82 : vector<8x128xi32> to vector<8x128xf32>
    %84 = arith.index_cast %c1_i32 : i32 to index
    %c0_38 = arith.constant 0 : index
    %c0_39 = arith.constant 0 : index
    %85 = vector.load %arg6[%84, %c0_38, %c0_39] : memref<16x8x128xf32, #tpu.memory_space<vmem>>, vector<1x8x128xf32>
    %86 = vector.shape_cast %85 : vector<1x8x128xf32> to vector<8x128xf32>
    %87 = vector.shape_cast %78 : vector<8x128xf32> to vector<1x8x128xf32>
    tpu.vector_store %arg6[%84, %c0_38, %c0_39], %87 {strides = array<i32>} : memref<16x8x128xf32, #tpu.memory_space<vmem>>, vector<1x8x128xf32>,
    %88 = arith.index_cast %c1_i32 : i32 to index
    %c0_40 = arith.constant 0 : index
    %c0_41 = arith.constant 0 : index
    %89 = vector.load %arg7[%88, %c0_40, %c0_41] : memref<16x8x128xf32, #tpu.memory_space<vmem>>, vector<1x8x128xf32>
    %90 = vector.shape_cast %89 : vector<1x8x128xf32> to vector<8x128xf32>
    %91 = vector.shape_cast %83 : vector<8x128xf32> to vector<1x8x128xf32>
    tpu.vector_store %arg7[%88, %c0_40, %c0_41], %91 {strides = array<i32>} : memref<16x8x128xf32, #tpu.memory_space<vmem>>, vector<1x8x128xf32>,
    %c2_i32 = arith.constant 2 : i32
    %92 = arith.index_cast %c2_i32 : i32 to index
    %c0_42 = arith.constant 0 : index
    %c0_43 = arith.constant 0 : index
    %93 = vector.load %arg2[%92, %c0_42, %c0_43] : memref<16x8x128xf32, #tpu.memory_space<vmem>>, vector<1x8x128xf32>
    %94 = vector.shape_cast %93 : vector<1x8x128xf32> to vector<8x128xf32>
    %95 = arith.truncf %83 : vector<8x128xf32> to vector<8x128xbf16>
    %cst_44 = arith.constant dense<0.000000e+00> : vector<8x128xf32>
    %96 = tpu.matmul %95, %11, %cst_44 {dimension_numbers = #tpu.dot_dimension_numbers<[1], [0], [0], [1], [0, 0, 1, 1], [], []>} : vector<8x128xbf16>, vector<128x128xbf16>, vector<8x128xf32> -> vector<8x128xf32>
    %97 = arith.addf %94, %96 : vector<8x128xf32>
    %98 = vector.broadcast %8 : vector<1x128xf32> to vector<8x128xf32>
    %99 = arith.mulf %98, %65 : vector<8x128xf32>
    %100 = vector.broadcast %10 : vector<1x128xf32> to vector<8x128xf32>
    %101 = arith.mulf %100, %83 : vector<8x128xf32>
    %102 = arith.addf %99, %101 : vector<8x128xf32>
    %cst_45 = arith.constant 1.800000e+00 : f32
    %103 = vector.broadcast %cst_45 : f32 to vector<8x128xf32>
    %104 = arith.mulf %103, %102 : vector<8x128xf32>
    %cst_46 = arith.constant 0.00999999977 : f32
    %105 = vector.broadcast %cst_46 : f32 to vector<8x128xf32>
    %106 = arith.addf %105, %104 : vector<8x128xf32>
    %107 = vector.broadcast %4 : vector<1x128xf32> to vector<8x128xf32>
    %108 = arith.mulf %107, %78 : vector<8x128xf32>
    %109 = vector.broadcast %6 : vector<1x128xf32> to vector<8x128xf32>
    %110 = arith.mulf %109, %97 : vector<8x128xf32>
    %111 = arith.addf %108, %110 : vector<8x128xf32>
    %112 = arith.mulf %106, %83 : vector<8x128xf32>
    %cst_47 = arith.constant 1.000000e+00 : f32
    %113 = vector.broadcast %cst_47 : f32 to vector<8x128xf32>
    %114 = arith.mulf %112, %113 : vector<8x128xf32>
    %115 = arith.subf %111, %114 : vector<8x128xf32>
    %116 = arith.subf %115, %106 : vector<8x128xf32>
    %cst_48 = arith.constant 0.000000e+00 : f32
    %117 = vector.broadcast %cst_48 : f32 to vector<8x128xf32>
    %118 = arith.cmpf ogt, %116, %117 : vector<8x128xf32>
    %119 = arith.extui %118 : vector<8x128xi1> to vector<8x128xi32>
    %120 = arith.sitofp %119 : vector<8x128xi32> to vector<8x128xf32>
    %121 = arith.index_cast %c2_i32 : i32 to index
    %c0_49 = arith.constant 0 : index
    %c0_50 = arith.constant 0 : index
    %122 = vector.load %arg6[%121, %c0_49, %c0_50] : memref<16x8x128xf32, #tpu.memory_space<vmem>>, vector<1x8x128xf32>
    %123 = vector.shape_cast %122 : vector<1x8x128xf32> to vector<8x128xf32>
    %124 = vector.shape_cast %115 : vector<8x128xf32> to vector<1x8x128xf32>
    tpu.vector_store %arg6[%121, %c0_49, %c0_50], %124 {strides = array<i32>} : memref<16x8x128xf32, #tpu.memory_space<vmem>>, vector<1x8x128xf32>,
    %125 = arith.index_cast %c2_i32 : i32 to index
    %c0_51 = arith.constant 0 : index
    %c0_52 = arith.constant 0 : index
    %126 = vector.load %arg7[%125, %c0_51, %c0_52] : memref<16x8x128xf32, #tpu.memory_space<vmem>>, vector<1x8x128xf32>
    %127 = vector.shape_cast %126 : vector<1x8x128xf32> to vector<8x128xf32>
    %128 = vector.shape_cast %120 : vector<8x128xf32> to vector<1x8x128xf32>
    tpu.vector_store %arg7[%125, %c0_51, %c0_52], %128 {strides = array<i32>} : memref<16x8x128xf32, #tpu.memory_space<vmem>>, vector<1x8x128xf32>,
    %c3_i32 = arith.constant 3 : i32
    %129 = arith.index_cast %c3_i32 : i32 to index
    %c0_53 = arith.constant 0 : index
    %c0_54 = arith.constant 0 : index
    %130 = vector.load %arg2[%129, %c0_53, %c0_54] : memref<16x8x128xf32, #tpu.memory_space<vmem>>, vector<1x8x128xf32>
    %131 = vector.shape_cast %130 : vector<1x8x128xf32> to vector<8x128xf32>
    %132 = arith.truncf %120 : vector<8x128xf32> to vector<8x128xbf16>
    %cst_55 = arith.constant dense<0.000000e+00> : vector<8x128xf32>
    %133 = tpu.matmul %132, %11, %cst_55 {dimension_numbers = #tpu.dot_dimension_numbers<[1], [0], [0], [1], [0, 0, 1, 1], [], []>} : vector<8x128xbf16>, vector<128x128xbf16>, vector<8x128xf32> -> vector<8x128xf32>
    %134 = arith.addf %131, %133 : vector<8x128xf32>
    %135 = vector.broadcast %8 : vector<1x128xf32> to vector<8x128xf32>
    %136 = arith.mulf %135, %102 : vector<8x128xf32>
    %137 = vector.broadcast %10 : vector<1x128xf32> to vector<8x128xf32>
    %138 = arith.mulf %137, %120 : vector<8x128xf32>
    %139 = arith.addf %136, %138 : vector<8x128xf32>
    %cst_56 = arith.constant 1.800000e+00 : f32
    %140 = vector.broadcast %cst_56 : f32 to vector<8x128xf32>
    %141 = arith.mulf %140, %139 : vector<8x128xf32>
    %cst_57 = arith.constant 0.00999999977 : f32
    %142 = vector.broadcast %cst_57 : f32 to vector<8x128xf32>
    %143 = arith.addf %142, %141 : vector<8x128xf32>
    %144 = vector.broadcast %4 : vector<1x128xf32> to vector<8x128xf32>
    %145 = arith.mulf %144, %115 : vector<8x128xf32>
    %146 = vector.broadcast %6 : vector<1x128xf32> to vector<8x128xf32>
    %147 = arith.mulf %146, %134 : vector<8x128xf32>
    %148 = arith.addf %145, %147 : vector<8x128xf32>
    %149 = arith.mulf %143, %120 : vector<8x128xf32>
    %cst_58 = arith.constant 1.000000e+00 : f32
    %150 = vector.broadcast %cst_58 : f32 to vector<8x128xf32>
    %151 = arith.mulf %149, %150 : vector<8x128xf32>
    %152 = arith.subf %148, %151 : vector<8x128xf32>
    %153 = arith.subf %152, %143 : vector<8x128xf32>
    %cst_59 = arith.constant 0.000000e+00 : f32
    %154 = vector.broadcast %cst_59 : f32 to vector<8x128xf32>
    %155 = arith.cmpf ogt, %153, %154 : vector<8x128xf32>
    %156 = arith.extui %155 : vector<8x128xi1> to vector<8x128xi32>
    %157 = arith.sitofp %156 : vector<8x128xi32> to vector<8x128xf32>
    %158 = arith.index_cast %c3_i32 : i32 to index
    %c0_60 = arith.constant 0 : index
    %c0_61 = arith.constant 0 : index
    %159 = vector.load %arg6[%158, %c0_60, %c0_61] : memref<16x8x128xf32, #tpu.memory_space<vmem>>, vector<1x8x128xf32>
    %160 = vector.shape_cast %159 : vector<1x8x128xf32> to vector<8x128xf32>
    %161 = vector.shape_cast %152 : vector<8x128xf32> to vector<1x8x128xf32>
    tpu.vector_store %arg6[%158, %c0_60, %c0_61], %161 {strides = array<i32>} : memref<16x8x128xf32, #tpu.memory_space<vmem>>, vector<1x8x128xf32>,
    %162 = arith.index_cast %c3_i32 : i32 to index
    %c0_62 = arith.constant 0 : index
    %c0_63 = arith.constant 0 : index
    %163 = vector.load %arg7[%162, %c0_62, %c0_63] : memref<16x8x128xf32, #tpu.memory_space<vmem>>, vector<1x8x128xf32>
    %164 = vector.shape_cast %163 : vector<1x8x128xf32> to vector<8x128xf32>
    %165 = vector.shape_cast %157 : vector<8x128xf32> to vector<1x8x128xf32>
    tpu.vector_store %arg7[%162, %c0_62, %c0_63], %165 {strides = array<i32>} : memref<16x8x128xf32, #tpu.memory_space<vmem>>, vector<1x8x128xf32>,
    %c4_i32 = arith.constant 4 : i32
    %166 = arith.index_cast %c4_i32 : i32 to index
    %c0_64 = arith.constant 0 : index
    %c0_65 = arith.constant 0 : index
    %167 = vector.load %arg2[%166, %c0_64, %c0_65] : memref<16x8x128xf32, #tpu.memory_space<vmem>>, vector<1x8x128xf32>
    %168 = vector.shape_cast %167 : vector<1x8x128xf32> to vector<8x128xf32>
    %169 = arith.truncf %157 : vector<8x128xf32> to vector<8x128xbf16>
    %cst_66 = arith.constant dense<0.000000e+00> : vector<8x128xf32>
    %170 = tpu.matmul %169, %11, %cst_66 {dimension_numbers = #tpu.dot_dimension_numbers<[1], [0], [0], [1], [0, 0, 1, 1], [], []>} : vector<8x128xbf16>, vector<128x128xbf16>, vector<8x128xf32> -> vector<8x128xf32>
    %171 = arith.addf %168, %170 : vector<8x128xf32>
    %172 = vector.broadcast %8 : vector<1x128xf32> to vector<8x128xf32>
    %173 = arith.mulf %172, %139 : vector<8x128xf32>
    %174 = vector.broadcast %10 : vector<1x128xf32> to vector<8x128xf32>
    %175 = arith.mulf %174, %157 : vector<8x128xf32>
    %176 = arith.addf %173, %175 : vector<8x128xf32>
    %cst_67 = arith.constant 1.800000e+00 : f32
    %177 = vector.broadcast %cst_67 : f32 to vector<8x128xf32>
    %178 = arith.mulf %177, %176 : vector<8x128xf32>
    %cst_68 = arith.constant 0.00999999977 : f32
    %179 = vector.broadcast %cst_68 : f32 to vector<8x128xf32>
    %180 = arith.addf %179, %178 : vector<8x128xf32>
    %181 = vector.broadcast %4 : vector<1x128xf32> to vector<8x128xf32>
    %182 = arith.mulf %181, %152 : vector<8x128xf32>
    %183 = vector.broadcast %6 : vector<1x128xf32> to vector<8x128xf32>
    %184 = arith.mulf %183, %171 : vector<8x128xf32>
    %185 = arith.addf %182, %184 : vector<8x128xf32>
    %186 = arith.mulf %180, %157 : vector<8x128xf32>
    %cst_69 = arith.constant 1.000000e+00 : f32
    %187 = vector.broadcast %cst_69 : f32 to vector<8x128xf32>
    %188 = arith.mulf %186, %187 : vector<8x128xf32>
    %189 = arith.subf %185, %188 : vector<8x128xf32>
    %190 = arith.subf %189, %180 : vector<8x128xf32>
    %cst_70 = arith.constant 0.000000e+00 : f32
    %191 = vector.broadcast %cst_70 : f32 to vector<8x128xf32>
    %192 = arith.cmpf ogt, %190, %191 : vector<8x128xf32>
    %193 = arith.extui %192 : vector<8x128xi1> to vector<8x128xi32>
    %194 = arith.sitofp %193 : vector<8x128xi32> to vector<8x128xf32>
    %195 = arith.index_cast %c4_i32 : i32 to index
    %c0_71 = arith.constant 0 : index
    %c0_72 = arith.constant 0 : index
    %196 = vector.load %arg6[%195, %c0_71, %c0_72] : memref<16x8x128xf32, #tpu.memory_space<vmem>>, vector<1x8x128xf32>
    %197 = vector.shape_cast %196 : vector<1x8x128xf32> to vector<8x128xf32>
    %198 = vector.shape_cast %189 : vector<8x128xf32> to vector<1x8x128xf32>
    tpu.vector_store %arg6[%195, %c0_71, %c0_72], %198 {strides = array<i32>} : memref<16x8x128xf32, #tpu.memory_space<vmem>>, vector<1x8x128xf32>,
    %199 = arith.index_cast %c4_i32 : i32 to index
    %c0_73 = arith.constant 0 : index
    %c0_74 = arith.constant 0 : index
    %200 = vector.load %arg7[%199, %c0_73, %c0_74] : memref<16x8x128xf32, #tpu.memory_space<vmem>>, vector<1x8x128xf32>
    %201 = vector.shape_cast %200 : vector<1x8x128xf32> to vector<8x128xf32>
    %202 = vector.shape_cast %194 : vector<8x128xf32> to vector<1x8x128xf32>
    tpu.vector_store %arg7[%199, %c0_73, %c0_74], %202 {strides = array<i32>} : memref<16x8x128xf32, #tpu.memory_space<vmem>>, vector<1x8x128xf32>,
    %c5_i32 = arith.constant 5 : i32
    %203 = arith.index_cast %c5_i32 : i32 to index
    %c0_75 = arith.constant 0 : index
    %c0_76 = arith.constant 0 : index
    %204 = vector.load %arg2[%203, %c0_75, %c0_76] : memref<16x8x128xf32, #tpu.memory_space<vmem>>, vector<1x8x128xf32>
    %205 = vector.shape_cast %204 : vector<1x8x128xf32> to vector<8x128xf32>
    %206 = arith.truncf %194 : vector<8x128xf32> to vector<8x128xbf16>
    %cst_77 = arith.constant dense<0.000000e+00> : vector<8x128xf32>
    %207 = tpu.matmul %206, %11, %cst_77 {dimension_numbers = #tpu.dot_dimension_numbers<[1], [0], [0], [1], [0, 0, 1, 1], [], []>} : vector<8x128xbf16>, vector<128x128xbf16>, vector<8x128xf32> -> vector<8x128xf32>
    %208 = arith.addf %205, %207 : vector<8x128xf32>
    %209 = vector.broadcast %8 : vector<1x128xf32> to vector<8x128xf32>
    %210 = arith.mulf %209, %176 : vector<8x128xf32>
    %211 = vector.broadcast %10 : vector<1x128xf32> to vector<8x128xf32>
    %212 = arith.mulf %211, %194 : vector<8x128xf32>
    %213 = arith.addf %210, %212 : vector<8x128xf32>
    %cst_78 = arith.constant 1.800000e+00 : f32
    %214 = vector.broadcast %cst_78 : f32 to vector<8x128xf32>
    %215 = arith.mulf %214, %213 : vector<8x128xf32>
    %cst_79 = arith.constant 0.00999999977 : f32
    %216 = vector.broadcast %cst_79 : f32 to vector<8x128xf32>
    %217 = arith.addf %216, %215 : vector<8x128xf32>
    %218 = vector.broadcast %4 : vector<1x128xf32> to vector<8x128xf32>
    %219 = arith.mulf %218, %189 : vector<8x128xf32>
    %220 = vector.broadcast %6 : vector<1x128xf32> to vector<8x128xf32>
    %221 = arith.mulf %220, %208 : vector<8x128xf32>
    %222 = arith.addf %219, %221 : vector<8x128xf32>
    %223 = arith.mulf %217, %194 : vector<8x128xf32>
    %cst_80 = arith.constant 1.000000e+00 : f32
    %224 = vector.broadcast %cst_80 : f32 to vector<8x128xf32>
    %225 = arith.mulf %223, %224 : vector<8x128xf32>
    %226 = arith.subf %222, %225 : vector<8x128xf32>
    %227 = arith.subf %226, %217 : vector<8x128xf32>
    %cst_81 = arith.constant 0.000000e+00 : f32
    %228 = vector.broadcast %cst_81 : f32 to vector<8x128xf32>
    %229 = arith.cmpf ogt, %227, %228 : vector<8x128xf32>
    %230 = arith.extui %229 : vector<8x128xi1> to vector<8x128xi32>
    %231 = arith.sitofp %230 : vector<8x128xi32> to vector<8x128xf32>
    %232 = arith.index_cast %c5_i32 : i32 to index
    %c0_82 = arith.constant 0 : index
    %c0_83 = arith.constant 0 : index
    %233 = vector.load %arg6[%232, %c0_82, %c0_83] : memref<16x8x128xf32, #tpu.memory_space<vmem>>, vector<1x8x128xf32>
    %234 = vector.shape_cast %233 : vector<1x8x128xf32> to vector<8x128xf32>
    %235 = vector.shape_cast %226 : vector<8x128xf32> to vector<1x8x128xf32>
    tpu.vector_store %arg6[%232, %c0_82, %c0_83], %235 {strides = array<i32>} : memref<16x8x128xf32, #tpu.memory_space<vmem>>, vector<1x8x128xf32>,
    %236 = arith.index_cast %c5_i32 : i32 to index
    %c0_84 = arith.constant 0 : index
    %c0_85 = arith.constant 0 : index
    %237 = vector.load %arg7[%236, %c0_84, %c0_85] : memref<16x8x128xf32, #tpu.memory_space<vmem>>, vector<1x8x128xf32>
    %238 = vector.shape_cast %237 : vector<1x8x128xf32> to vector<8x128xf32>
    %239 = vector.shape_cast %231 : vector<8x128xf32> to vector<1x8x128xf32>
    tpu.vector_store %arg7[%236, %c0_84, %c0_85], %239 {strides = array<i32>} : memref<16x8x128xf32, #tpu.memory_space<vmem>>, vector<1x8x128xf32>,
    %c6_i32 = arith.constant 6 : i32
    %240 = arith.index_cast %c6_i32 : i32 to index
    %c0_86 = arith.constant 0 : index
    %c0_87 = arith.constant 0 : index
    %241 = vector.load %arg2[%240, %c0_86, %c0_87] : memref<16x8x128xf32, #tpu.memory_space<vmem>>, vector<1x8x128xf32>
    %242 = vector.shape_cast %241 : vector<1x8x128xf32> to vector<8x128xf32>
    %243 = arith.truncf %231 : vector<8x128xf32> to vector<8x128xbf16>
    %cst_88 = arith.constant dense<0.000000e+00> : vector<8x128xf32>
    %244 = tpu.matmul %243, %11, %cst_88 {dimension_numbers = #tpu.dot_dimension_numbers<[1], [0], [0], [1], [0, 0, 1, 1], [], []>} : vector<8x128xbf16>, vector<128x128xbf16>, vector<8x128xf32> -> vector<8x128xf32>
    %245 = arith.addf %242, %244 : vector<8x128xf32>
    %246 = vector.broadcast %8 : vector<1x128xf32> to vector<8x128xf32>
    %247 = arith.mulf %246, %213 : vector<8x128xf32>
    %248 = vector.broadcast %10 : vector<1x128xf32> to vector<8x128xf32>
    %249 = arith.mulf %248, %231 : vector<8x128xf32>
    %250 = arith.addf %247, %249 : vector<8x128xf32>
    %cst_89 = arith.constant 1.800000e+00 : f32
    %251 = vector.broadcast %cst_89 : f32 to vector<8x128xf32>
    %252 = arith.mulf %251, %250 : vector<8x128xf32>
    %cst_90 = arith.constant 0.00999999977 : f32
    %253 = vector.broadcast %cst_90 : f32 to vector<8x128xf32>
    %254 = arith.addf %253, %252 : vector<8x128xf32>
    %255 = vector.broadcast %4 : vector<1x128xf32> to vector<8x128xf32>
    %256 = arith.mulf %255, %226 : vector<8x128xf32>
    %257 = vector.broadcast %6 : vector<1x128xf32> to vector<8x128xf32>
    %258 = arith.mulf %257, %245 : vector<8x128xf32>
    %259 = arith.addf %256, %258 : vector<8x128xf32>
    %260 = arith.mulf %254, %231 : vector<8x128xf32>
    %cst_91 = arith.constant 1.000000e+00 : f32
    %261 = vector.broadcast %cst_91 : f32 to vector<8x128xf32>
    %262 = arith.mulf %260, %261 : vector<8x128xf32>
    %263 = arith.subf %259, %262 : vector<8x128xf32>
    %264 = arith.subf %263, %254 : vector<8x128xf32>
    %cst_92 = arith.constant 0.000000e+00 : f32
    %265 = vector.broadcast %cst_92 : f32 to vector<8x128xf32>
    %266 = arith.cmpf ogt, %264, %265 : vector<8x128xf32>
    %267 = arith.extui %266 : vector<8x128xi1> to vector<8x128xi32>
    %268 = arith.sitofp %267 : vector<8x128xi32> to vector<8x128xf32>
    %269 = arith.index_cast %c6_i32 : i32 to index
    %c0_93 = arith.constant 0 : index
    %c0_94 = arith.constant 0 : index
    %270 = vector.load %arg6[%269, %c0_93, %c0_94] : memref<16x8x128xf32, #tpu.memory_space<vmem>>, vector<1x8x128xf32>
    %271 = vector.shape_cast %270 : vector<1x8x128xf32> to vector<8x128xf32>
    %272 = vector.shape_cast %263 : vector<8x128xf32> to vector<1x8x128xf32>
    tpu.vector_store %arg6[%269, %c0_93, %c0_94], %272 {strides = array<i32>} : memref<16x8x128xf32, #tpu.memory_space<vmem>>, vector<1x8x128xf32>,
    %273 = arith.index_cast %c6_i32 : i32 to index
    %c0_95 = arith.constant 0 : index
    %c0_96 = arith.constant 0 : index
    %274 = vector.load %arg7[%273, %c0_95, %c0_96] : memref<16x8x128xf32, #tpu.memory_space<vmem>>, vector<1x8x128xf32>
    %275 = vector.shape_cast %274 : vector<1x8x128xf32> to vector<8x128xf32>
    %276 = vector.shape_cast %268 : vector<8x128xf32> to vector<1x8x128xf32>
    tpu.vector_store %arg7[%273, %c0_95, %c0_96], %276 {strides = array<i32>} : memref<16x8x128xf32, #tpu.memory_space<vmem>>, vector<1x8x128xf32>,
    %c7_i32 = arith.constant 7 : i32
    %277 = arith.index_cast %c7_i32 : i32 to index
    %c0_97 = arith.constant 0 : index
    %c0_98 = arith.constant 0 : index
    %278 = vector.load %arg2[%277, %c0_97, %c0_98] : memref<16x8x128xf32, #tpu.memory_space<vmem>>, vector<1x8x128xf32>
    %279 = vector.shape_cast %278 : vector<1x8x128xf32> to vector<8x128xf32>
    %280 = arith.truncf %268 : vector<8x128xf32> to vector<8x128xbf16>
    %cst_99 = arith.constant dense<0.000000e+00> : vector<8x128xf32>
    %281 = tpu.matmul %280, %11, %cst_99 {dimension_numbers = #tpu.dot_dimension_numbers<[1], [0], [0], [1], [0, 0, 1, 1], [], []>} : vector<8x128xbf16>, vector<128x128xbf16>, vector<8x128xf32> -> vector<8x128xf32>
    %282 = arith.addf %279, %281 : vector<8x128xf32>
    %283 = vector.broadcast %8 : vector<1x128xf32> to vector<8x128xf32>
    %284 = arith.mulf %283, %250 : vector<8x128xf32>
    %285 = vector.broadcast %10 : vector<1x128xf32> to vector<8x128xf32>
    %286 = arith.mulf %285, %268 : vector<8x128xf32>
    %287 = arith.addf %284, %286 : vector<8x128xf32>
    %cst_100 = arith.constant 1.800000e+00 : f32
    %288 = vector.broadcast %cst_100 : f32 to vector<8x128xf32>
    %289 = arith.mulf %288, %287 : vector<8x128xf32>
    %cst_101 = arith.constant 0.00999999977 : f32
    %290 = vector.broadcast %cst_101 : f32 to vector<8x128xf32>
    %291 = arith.addf %290, %289 : vector<8x128xf32>
    %292 = vector.broadcast %4 : vector<1x128xf32> to vector<8x128xf32>
    %293 = arith.mulf %292, %263 : vector<8x128xf32>
    %294 = vector.broadcast %6 : vector<1x128xf32> to vector<8x128xf32>
    %295 = arith.mulf %294, %282 : vector<8x128xf32>
    %296 = arith.addf %293, %295 : vector<8x128xf32>
    %297 = arith.mulf %291, %268 : vector<8x128xf32>
    %cst_102 = arith.constant 1.000000e+00 : f32
    %298 = vector.broadcast %cst_102 : f32 to vector<8x128xf32>
    %299 = arith.mulf %297, %298 : vector<8x128xf32>
    %300 = arith.subf %296, %299 : vector<8x128xf32>
    %301 = arith.subf %300, %291 : vector<8x128xf32>
    %cst_103 = arith.constant 0.000000e+00 : f32
    %302 = vector.broadcast %cst_103 : f32 to vector<8x128xf32>
    %303 = arith.cmpf ogt, %301, %302 : vector<8x128xf32>
    %304 = arith.extui %303 : vector<8x128xi1> to vector<8x128xi32>
    %305 = arith.sitofp %304 : vector<8x128xi32> to vector<8x128xf32>
    %306 = arith.index_cast %c7_i32 : i32 to index
    %c0_104 = arith.constant 0 : index
    %c0_105 = arith.constant 0 : index
    %307 = vector.load %arg6[%306, %c0_104, %c0_105] : memref<16x8x128xf32, #tpu.memory_space<vmem>>, vector<1x8x128xf32>
    %308 = vector.shape_cast %307 : vector<1x8x128xf32> to vector<8x128xf32>
    %309 = vector.shape_cast %300 : vector<8x128xf32> to vector<1x8x128xf32>
    tpu.vector_store %arg6[%306, %c0_104, %c0_105], %309 {strides = array<i32>} : memref<16x8x128xf32, #tpu.memory_space<vmem>>, vector<1x8x128xf32>,
    %310 = arith.index_cast %c7_i32 : i32 to index
    %c0_106 = arith.constant 0 : index
    %c0_107 = arith.constant 0 : index
    %311 = vector.load %arg7[%310, %c0_106, %c0_107] : memref<16x8x128xf32, #tpu.memory_space<vmem>>, vector<1x8x128xf32>
    %312 = vector.shape_cast %311 : vector<1x8x128xf32> to vector<8x128xf32>
    %313 = vector.shape_cast %305 : vector<8x128xf32> to vector<1x8x128xf32>
    tpu.vector_store %arg7[%310, %c0_106, %c0_107], %313 {strides = array<i32>} : memref<16x8x128xf32, #tpu.memory_space<vmem>>, vector<1x8x128xf32>,
    %c8_i32 = arith.constant 8 : i32
    %314 = arith.index_cast %c8_i32 : i32 to index
    %c0_108 = arith.constant 0 : index
    %c0_109 = arith.constant 0 : index
    %315 = vector.load %arg2[%314, %c0_108, %c0_109] : memref<16x8x128xf32, #tpu.memory_space<vmem>>, vector<1x8x128xf32>
    %316 = vector.shape_cast %315 : vector<1x8x128xf32> to vector<8x128xf32>
    %317 = arith.truncf %305 : vector<8x128xf32> to vector<8x128xbf16>
    %cst_110 = arith.constant dense<0.000000e+00> : vector<8x128xf32>
    %318 = tpu.matmul %317, %11, %cst_110 {dimension_numbers = #tpu.dot_dimension_numbers<[1], [0], [0], [1], [0, 0, 1, 1], [], []>} : vector<8x128xbf16>, vector<128x128xbf16>, vector<8x128xf32> -> vector<8x128xf32>
    %319 = arith.addf %316, %318 : vector<8x128xf32>
    %320 = vector.broadcast %8 : vector<1x128xf32> to vector<8x128xf32>
    %321 = arith.mulf %320, %287 : vector<8x128xf32>
    %322 = vector.broadcast %10 : vector<1x128xf32> to vector<8x128xf32>
    %323 = arith.mulf %322, %305 : vector<8x128xf32>
    %324 = arith.addf %321, %323 : vector<8x128xf32>
    %cst_111 = arith.constant 1.800000e+00 : f32
    %325 = vector.broadcast %cst_111 : f32 to vector<8x128xf32>
    %326 = arith.mulf %325, %324 : vector<8x128xf32>
    %cst_112 = arith.constant 0.00999999977 : f32
    %327 = vector.broadcast %cst_112 : f32 to vector<8x128xf32>
    %328 = arith.addf %327, %326 : vector<8x128xf32>
    %329 = vector.broadcast %4 : vector<1x128xf32> to vector<8x128xf32>
    %330 = arith.mulf %329, %300 : vector<8x128xf32>
    %331 = vector.broadcast %6 : vector<1x128xf32> to vector<8x128xf32>
    %332 = arith.mulf %331, %319 : vector<8x128xf32>
    %333 = arith.addf %330, %332 : vector<8x128xf32>
    %334 = arith.mulf %328, %305 : vector<8x128xf32>
    %cst_113 = arith.constant 1.000000e+00 : f32
    %335 = vector.broadcast %cst_113 : f32 to vector<8x128xf32>
    %336 = arith.mulf %334, %335 : vector<8x128xf32>
    %337 = arith.subf %333, %336 : vector<8x128xf32>
    %338 = arith.subf %337, %328 : vector<8x128xf32>
    %cst_114 = arith.constant 0.000000e+00 : f32
    %339 = vector.broadcast %cst_114 : f32 to vector<8x128xf32>
    %340 = arith.cmpf ogt, %338, %339 : vector<8x128xf32>
    %341 = arith.extui %340 : vector<8x128xi1> to vector<8x128xi32>
    %342 = arith.sitofp %341 : vector<8x128xi32> to vector<8x128xf32>
    %343 = arith.index_cast %c8_i32 : i32 to index
    %c0_115 = arith.constant 0 : index
    %c0_116 = arith.constant 0 : index
    %344 = vector.load %arg6[%343, %c0_115, %c0_116] : memref<16x8x128xf32, #tpu.memory_space<vmem>>, vector<1x8x128xf32>
    %345 = vector.shape_cast %344 : vector<1x8x128xf32> to vector<8x128xf32>
    %346 = vector.shape_cast %337 : vector<8x128xf32> to vector<1x8x128xf32>
    tpu.vector_store %arg6[%343, %c0_115, %c0_116], %346 {strides = array<i32>} : memref<16x8x128xf32, #tpu.memory_space<vmem>>, vector<1x8x128xf32>,
    %347 = arith.index_cast %c8_i32 : i32 to index
    %c0_117 = arith.constant 0 : index
    %c0_118 = arith.constant 0 : index
    %348 = vector.load %arg7[%347, %c0_117, %c0_118] : memref<16x8x128xf32, #tpu.memory_space<vmem>>, vector<1x8x128xf32>
    %349 = vector.shape_cast %348 : vector<1x8x128xf32> to vector<8x128xf32>
    %350 = vector.shape_cast %342 : vector<8x128xf32> to vector<1x8x128xf32>
    tpu.vector_store %arg7[%347, %c0_117, %c0_118], %350 {strides = array<i32>} : memref<16x8x128xf32, #tpu.memory_space<vmem>>, vector<1x8x128xf32>,
    %c9_i32 = arith.constant 9 : i32
    %351 = arith.index_cast %c9_i32 : i32 to index
    %c0_119 = arith.constant 0 : index
    %c0_120 = arith.constant 0 : index
    %352 = vector.load %arg2[%351, %c0_119, %c0_120] : memref<16x8x128xf32, #tpu.memory_space<vmem>>, vector<1x8x128xf32>
    %353 = vector.shape_cast %352 : vector<1x8x128xf32> to vector<8x128xf32>
    %354 = arith.truncf %342 : vector<8x128xf32> to vector<8x128xbf16>
    %cst_121 = arith.constant dense<0.000000e+00> : vector<8x128xf32>
    %355 = tpu.matmul %354, %11, %cst_121 {dimension_numbers = #tpu.dot_dimension_numbers<[1], [0], [0], [1], [0, 0, 1, 1], [], []>} : vector<8x128xbf16>, vector<128x128xbf16>, vector<8x128xf32> -> vector<8x128xf32>
    %356 = arith.addf %353, %355 : vector<8x128xf32>
    %357 = vector.broadcast %8 : vector<1x128xf32> to vector<8x128xf32>
    %358 = arith.mulf %357, %324 : vector<8x128xf32>
    %359 = vector.broadcast %10 : vector<1x128xf32> to vector<8x128xf32>
    %360 = arith.mulf %359, %342 : vector<8x128xf32>
    %361 = arith.addf %358, %360 : vector<8x128xf32>
    %cst_122 = arith.constant 1.800000e+00 : f32
    %362 = vector.broadcast %cst_122 : f32 to vector<8x128xf32>
    %363 = arith.mulf %362, %361 : vector<8x128xf32>
    %cst_123 = arith.constant 0.00999999977 : f32
    %364 = vector.broadcast %cst_123 : f32 to vector<8x128xf32>
    %365 = arith.addf %364, %363 : vector<8x128xf32>
    %366 = vector.broadcast %4 : vector<1x128xf32> to vector<8x128xf32>
    %367 = arith.mulf %366, %337 : vector<8x128xf32>
    %368 = vector.broadcast %6 : vector<1x128xf32> to vector<8x128xf32>
    %369 = arith.mulf %368, %356 : vector<8x128xf32>
    %370 = arith.addf %367, %369 : vector<8x128xf32>
    %371 = arith.mulf %365, %342 : vector<8x128xf32>
    %cst_124 = arith.constant 1.000000e+00 : f32
    %372 = vector.broadcast %cst_124 : f32 to vector<8x128xf32>
    %373 = arith.mulf %371, %372 : vector<8x128xf32>
    %374 = arith.subf %370, %373 : vector<8x128xf32>
    %375 = arith.subf %374, %365 : vector<8x128xf32>
    %cst_125 = arith.constant 0.000000e+00 : f32
    %376 = vector.broadcast %cst_125 : f32 to vector<8x128xf32>
    %377 = arith.cmpf ogt, %375, %376 : vector<8x128xf32>
    %378 = arith.extui %377 : vector<8x128xi1> to vector<8x128xi32>
    %379 = arith.sitofp %378 : vector<8x128xi32> to vector<8x128xf32>
    %380 = arith.index_cast %c9_i32 : i32 to index
    %c0_126 = arith.constant 0 : index
    %c0_127 = arith.constant 0 : index
    %381 = vector.load %arg6[%380, %c0_126, %c0_127] : memref<16x8x128xf32, #tpu.memory_space<vmem>>, vector<1x8x128xf32>
    %382 = vector.shape_cast %381 : vector<1x8x128xf32> to vector<8x128xf32>
    %383 = vector.shape_cast %374 : vector<8x128xf32> to vector<1x8x128xf32>
    tpu.vector_store %arg6[%380, %c0_126, %c0_127], %383 {strides = array<i32>} : memref<16x8x128xf32, #tpu.memory_space<vmem>>, vector<1x8x128xf32>,
    %384 = arith.index_cast %c9_i32 : i32 to index
    %c0_128 = arith.constant 0 : index
    %c0_129 = arith.constant 0 : index
    %385 = vector.load %arg7[%384, %c0_128, %c0_129] : memref<16x8x128xf32, #tpu.memory_space<vmem>>, vector<1x8x128xf32>
    %386 = vector.shape_cast %385 : vector<1x8x128xf32> to vector<8x128xf32>
    %387 = vector.shape_cast %379 : vector<8x128xf32> to vector<1x8x128xf32>
    tpu.vector_store %arg7[%384, %c0_128, %c0_129], %387 {strides = array<i32>} : memref<16x8x128xf32, #tpu.memory_space<vmem>>, vector<1x8x128xf32>,
    %c10_i32 = arith.constant 10 : i32
    %388 = arith.index_cast %c10_i32 : i32 to index
    %c0_130 = arith.constant 0 : index
    %c0_131 = arith.constant 0 : index
    %389 = vector.load %arg2[%388, %c0_130, %c0_131] : memref<16x8x128xf32, #tpu.memory_space<vmem>>, vector<1x8x128xf32>
    %390 = vector.shape_cast %389 : vector<1x8x128xf32> to vector<8x128xf32>
    %391 = arith.truncf %379 : vector<8x128xf32> to vector<8x128xbf16>
    %cst_132 = arith.constant dense<0.000000e+00> : vector<8x128xf32>
    %392 = tpu.matmul %391, %11, %cst_132 {dimension_numbers = #tpu.dot_dimension_numbers<[1], [0], [0], [1], [0, 0, 1, 1], [], []>} : vector<8x128xbf16>, vector<128x128xbf16>, vector<8x128xf32> -> vector<8x128xf32>
    %393 = arith.addf %390, %392 : vector<8x128xf32>
    %394 = vector.broadcast %8 : vector<1x128xf32> to vector<8x128xf32>
    %395 = arith.mulf %394, %361 : vector<8x128xf32>
    %396 = vector.broadcast %10 : vector<1x128xf32> to vector<8x128xf32>
    %397 = arith.mulf %396, %379 : vector<8x128xf32>
    %398 = arith.addf %395, %397 : vector<8x128xf32>
    %cst_133 = arith.constant 1.800000e+00 : f32
    %399 = vector.broadcast %cst_133 : f32 to vector<8x128xf32>
    %400 = arith.mulf %399, %398 : vector<8x128xf32>
    %cst_134 = arith.constant 0.00999999977 : f32
    %401 = vector.broadcast %cst_134 : f32 to vector<8x128xf32>
    %402 = arith.addf %401, %400 : vector<8x128xf32>
    %403 = vector.broadcast %4 : vector<1x128xf32> to vector<8x128xf32>
    %404 = arith.mulf %403, %374 : vector<8x128xf32>
    %405 = vector.broadcast %6 : vector<1x128xf32> to vector<8x128xf32>
    %406 = arith.mulf %405, %393 : vector<8x128xf32>
    %407 = arith.addf %404, %406 : vector<8x128xf32>
    %408 = arith.mulf %402, %379 : vector<8x128xf32>
    %cst_135 = arith.constant 1.000000e+00 : f32
    %409 = vector.broadcast %cst_135 : f32 to vector<8x128xf32>
    %410 = arith.mulf %408, %409 : vector<8x128xf32>
    %411 = arith.subf %407, %410 : vector<8x128xf32>
    %412 = arith.subf %411, %402 : vector<8x128xf32>
    %cst_136 = arith.constant 0.000000e+00 : f32
    %413 = vector.broadcast %cst_136 : f32 to vector<8x128xf32>
    %414 = arith.cmpf ogt, %412, %413 : vector<8x128xf32>
    %415 = arith.extui %414 : vector<8x128xi1> to vector<8x128xi32>
    %416 = arith.sitofp %415 : vector<8x128xi32> to vector<8x128xf32>
    %417 = arith.index_cast %c10_i32 : i32 to index
    %c0_137 = arith.constant 0 : index
    %c0_138 = arith.constant 0 : index
    %418 = vector.load %arg6[%417, %c0_137, %c0_138] : memref<16x8x128xf32, #tpu.memory_space<vmem>>, vector<1x8x128xf32>
    %419 = vector.shape_cast %418 : vector<1x8x128xf32> to vector<8x128xf32>
    %420 = vector.shape_cast %411 : vector<8x128xf32> to vector<1x8x128xf32>
    tpu.vector_store %arg6[%417, %c0_137, %c0_138], %420 {strides = array<i32>} : memref<16x8x128xf32, #tpu.memory_space<vmem>>, vector<1x8x128xf32>,
    %421 = arith.index_cast %c10_i32 : i32 to index
    %c0_139 = arith.constant 0 : index
    %c0_140 = arith.constant 0 : index
    %422 = vector.load %arg7[%421, %c0_139, %c0_140] : memref<16x8x128xf32, #tpu.memory_space<vmem>>, vector<1x8x128xf32>
    %423 = vector.shape_cast %422 : vector<1x8x128xf32> to vector<8x128xf32>
    %424 = vector.shape_cast %416 : vector<8x128xf32> to vector<1x8x128xf32>
    tpu.vector_store %arg7[%421, %c0_139, %c0_140], %424 {strides = array<i32>} : memref<16x8x128xf32, #tpu.memory_space<vmem>>, vector<1x8x128xf32>,
    %c11_i32 = arith.constant 11 : i32
    %425 = arith.index_cast %c11_i32 : i32 to index
    %c0_141 = arith.constant 0 : index
    %c0_142 = arith.constant 0 : index
    %426 = vector.load %arg2[%425, %c0_141, %c0_142] : memref<16x8x128xf32, #tpu.memory_space<vmem>>, vector<1x8x128xf32>
    %427 = vector.shape_cast %426 : vector<1x8x128xf32> to vector<8x128xf32>
    %428 = arith.truncf %416 : vector<8x128xf32> to vector<8x128xbf16>
    %cst_143 = arith.constant dense<0.000000e+00> : vector<8x128xf32>
    %429 = tpu.matmul %428, %11, %cst_143 {dimension_numbers = #tpu.dot_dimension_numbers<[1], [0], [0], [1], [0, 0, 1, 1], [], []>} : vector<8x128xbf16>, vector<128x128xbf16>, vector<8x128xf32> -> vector<8x128xf32>
    %430 = arith.addf %427, %429 : vector<8x128xf32>
    %431 = vector.broadcast %8 : vector<1x128xf32> to vector<8x128xf32>
    %432 = arith.mulf %431, %398 : vector<8x128xf32>
    %433 = vector.broadcast %10 : vector<1x128xf32> to vector<8x128xf32>
    %434 = arith.mulf %433, %416 : vector<8x128xf32>
    %435 = arith.addf %432, %434 : vector<8x128xf32>
    %cst_144 = arith.constant 1.800000e+00 : f32
    %436 = vector.broadcast %cst_144 : f32 to vector<8x128xf32>
    %437 = arith.mulf %436, %435 : vector<8x128xf32>
    %cst_145 = arith.constant 0.00999999977 : f32
    %438 = vector.broadcast %cst_145 : f32 to vector<8x128xf32>
    %439 = arith.addf %438, %437 : vector<8x128xf32>
    %440 = vector.broadcast %4 : vector<1x128xf32> to vector<8x128xf32>
    %441 = arith.mulf %440, %411 : vector<8x128xf32>
    %442 = vector.broadcast %6 : vector<1x128xf32> to vector<8x128xf32>
    %443 = arith.mulf %442, %430 : vector<8x128xf32>
    %444 = arith.addf %441, %443 : vector<8x128xf32>
    %445 = arith.mulf %439, %416 : vector<8x128xf32>
    %cst_146 = arith.constant 1.000000e+00 : f32
    %446 = vector.broadcast %cst_146 : f32 to vector<8x128xf32>
    %447 = arith.mulf %445, %446 : vector<8x128xf32>
    %448 = arith.subf %444, %447 : vector<8x128xf32>
    %449 = arith.subf %448, %439 : vector<8x128xf32>
    %cst_147 = arith.constant 0.000000e+00 : f32
    %450 = vector.broadcast %cst_147 : f32 to vector<8x128xf32>
    %451 = arith.cmpf ogt, %449, %450 : vector<8x128xf32>
    %452 = arith.extui %451 : vector<8x128xi1> to vector<8x128xi32>
    %453 = arith.sitofp %452 : vector<8x128xi32> to vector<8x128xf32>
    %454 = arith.index_cast %c11_i32 : i32 to index
    %c0_148 = arith.constant 0 : index
    %c0_149 = arith.constant 0 : index
    %455 = vector.load %arg6[%454, %c0_148, %c0_149] : memref<16x8x128xf32, #tpu.memory_space<vmem>>, vector<1x8x128xf32>
    %456 = vector.shape_cast %455 : vector<1x8x128xf32> to vector<8x128xf32>
    %457 = vector.shape_cast %448 : vector<8x128xf32> to vector<1x8x128xf32>
    tpu.vector_store %arg6[%454, %c0_148, %c0_149], %457 {strides = array<i32>} : memref<16x8x128xf32, #tpu.memory_space<vmem>>, vector<1x8x128xf32>,
    %458 = arith.index_cast %c11_i32 : i32 to index
    %c0_150 = arith.constant 0 : index
    %c0_151 = arith.constant 0 : index
    %459 = vector.load %arg7[%458, %c0_150, %c0_151] : memref<16x8x128xf32, #tpu.memory_space<vmem>>, vector<1x8x128xf32>
    %460 = vector.shape_cast %459 : vector<1x8x128xf32> to vector<8x128xf32>
    %461 = vector.shape_cast %453 : vector<8x128xf32> to vector<1x8x128xf32>
    tpu.vector_store %arg7[%458, %c0_150, %c0_151], %461 {strides = array<i32>} : memref<16x8x128xf32, #tpu.memory_space<vmem>>, vector<1x8x128xf32>,
    %c12_i32 = arith.constant 12 : i32
    %462 = arith.index_cast %c12_i32 : i32 to index
    %c0_152 = arith.constant 0 : index
    %c0_153 = arith.constant 0 : index
    %463 = vector.load %arg2[%462, %c0_152, %c0_153] : memref<16x8x128xf32, #tpu.memory_space<vmem>>, vector<1x8x128xf32>
    %464 = vector.shape_cast %463 : vector<1x8x128xf32> to vector<8x128xf32>
    %465 = arith.truncf %453 : vector<8x128xf32> to vector<8x128xbf16>
    %cst_154 = arith.constant dense<0.000000e+00> : vector<8x128xf32>
    %466 = tpu.matmul %465, %11, %cst_154 {dimension_numbers = #tpu.dot_dimension_numbers<[1], [0], [0], [1], [0, 0, 1, 1], [], []>} : vector<8x128xbf16>, vector<128x128xbf16>, vector<8x128xf32> -> vector<8x128xf32>
    %467 = arith.addf %464, %466 : vector<8x128xf32>
    %468 = vector.broadcast %8 : vector<1x128xf32> to vector<8x128xf32>
    %469 = arith.mulf %468, %435 : vector<8x128xf32>
    %470 = vector.broadcast %10 : vector<1x128xf32> to vector<8x128xf32>
    %471 = arith.mulf %470, %453 : vector<8x128xf32>
    %472 = arith.addf %469, %471 : vector<8x128xf32>
    %cst_155 = arith.constant 1.800000e+00 : f32
    %473 = vector.broadcast %cst_155 : f32 to vector<8x128xf32>
    %474 = arith.mulf %473, %472 : vector<8x128xf32>
    %cst_156 = arith.constant 0.00999999977 : f32
    %475 = vector.broadcast %cst_156 : f32 to vector<8x128xf32>
    %476 = arith.addf %475, %474 : vector<8x128xf32>
    %477 = vector.broadcast %4 : vector<1x128xf32> to vector<8x128xf32>
    %478 = arith.mulf %477, %448 : vector<8x128xf32>
    %479 = vector.broadcast %6 : vector<1x128xf32> to vector<8x128xf32>
    %480 = arith.mulf %479, %467 : vector<8x128xf32>
    %481 = arith.addf %478, %480 : vector<8x128xf32>
    %482 = arith.mulf %476, %453 : vector<8x128xf32>
    %cst_157 = arith.constant 1.000000e+00 : f32
    %483 = vector.broadcast %cst_157 : f32 to vector<8x128xf32>
    %484 = arith.mulf %482, %483 : vector<8x128xf32>
    %485 = arith.subf %481, %484 : vector<8x128xf32>
    %486 = arith.subf %485, %476 : vector<8x128xf32>
    %cst_158 = arith.constant 0.000000e+00 : f32
    %487 = vector.broadcast %cst_158 : f32 to vector<8x128xf32>
    %488 = arith.cmpf ogt, %486, %487 : vector<8x128xf32>
    %489 = arith.extui %488 : vector<8x128xi1> to vector<8x128xi32>
    %490 = arith.sitofp %489 : vector<8x128xi32> to vector<8x128xf32>
    %491 = arith.index_cast %c12_i32 : i32 to index
    %c0_159 = arith.constant 0 : index
    %c0_160 = arith.constant 0 : index
    %492 = vector.load %arg6[%491, %c0_159, %c0_160] : memref<16x8x128xf32, #tpu.memory_space<vmem>>, vector<1x8x128xf32>
    %493 = vector.shape_cast %492 : vector<1x8x128xf32> to vector<8x128xf32>
    %494 = vector.shape_cast %485 : vector<8x128xf32> to vector<1x8x128xf32>
    tpu.vector_store %arg6[%491, %c0_159, %c0_160], %494 {strides = array<i32>} : memref<16x8x128xf32, #tpu.memory_space<vmem>>, vector<1x8x128xf32>,
    %495 = arith.index_cast %c12_i32 : i32 to index
    %c0_161 = arith.constant 0 : index
    %c0_162 = arith.constant 0 : index
    %496 = vector.load %arg7[%495, %c0_161, %c0_162] : memref<16x8x128xf32, #tpu.memory_space<vmem>>, vector<1x8x128xf32>
    %497 = vector.shape_cast %496 : vector<1x8x128xf32> to vector<8x128xf32>
    %498 = vector.shape_cast %490 : vector<8x128xf32> to vector<1x8x128xf32>
    tpu.vector_store %arg7[%495, %c0_161, %c0_162], %498 {strides = array<i32>} : memref<16x8x128xf32, #tpu.memory_space<vmem>>, vector<1x8x128xf32>,
    %c13_i32 = arith.constant 13 : i32
    %499 = arith.index_cast %c13_i32 : i32 to index
    %c0_163 = arith.constant 0 : index
    %c0_164 = arith.constant 0 : index
    %500 = vector.load %arg2[%499, %c0_163, %c0_164] : memref<16x8x128xf32, #tpu.memory_space<vmem>>, vector<1x8x128xf32>
    %501 = vector.shape_cast %500 : vector<1x8x128xf32> to vector<8x128xf32>
    %502 = arith.truncf %490 : vector<8x128xf32> to vector<8x128xbf16>
    %cst_165 = arith.constant dense<0.000000e+00> : vector<8x128xf32>
    %503 = tpu.matmul %502, %11, %cst_165 {dimension_numbers = #tpu.dot_dimension_numbers<[1], [0], [0], [1], [0, 0, 1, 1], [], []>} : vector<8x128xbf16>, vector<128x128xbf16>, vector<8x128xf32> -> vector<8x128xf32>
    %504 = arith.addf %501, %503 : vector<8x128xf32>
    %505 = vector.broadcast %8 : vector<1x128xf32> to vector<8x128xf32>
    %506 = arith.mulf %505, %472 : vector<8x128xf32>
    %507 = vector.broadcast %10 : vector<1x128xf32> to vector<8x128xf32>
    %508 = arith.mulf %507, %490 : vector<8x128xf32>
    %509 = arith.addf %506, %508 : vector<8x128xf32>
    %cst_166 = arith.constant 1.800000e+00 : f32
    %510 = vector.broadcast %cst_166 : f32 to vector<8x128xf32>
    %511 = arith.mulf %510, %509 : vector<8x128xf32>
    %cst_167 = arith.constant 0.00999999977 : f32
    %512 = vector.broadcast %cst_167 : f32 to vector<8x128xf32>
    %513 = arith.addf %512, %511 : vector<8x128xf32>
    %514 = vector.broadcast %4 : vector<1x128xf32> to vector<8x128xf32>
    %515 = arith.mulf %514, %485 : vector<8x128xf32>
    %516 = vector.broadcast %6 : vector<1x128xf32> to vector<8x128xf32>
    %517 = arith.mulf %516, %504 : vector<8x128xf32>
    %518 = arith.addf %515, %517 : vector<8x128xf32>
    %519 = arith.mulf %513, %490 : vector<8x128xf32>
    %cst_168 = arith.constant 1.000000e+00 : f32
    %520 = vector.broadcast %cst_168 : f32 to vector<8x128xf32>
    %521 = arith.mulf %519, %520 : vector<8x128xf32>
    %522 = arith.subf %518, %521 : vector<8x128xf32>
    %523 = arith.subf %522, %513 : vector<8x128xf32>
    %cst_169 = arith.constant 0.000000e+00 : f32
    %524 = vector.broadcast %cst_169 : f32 to vector<8x128xf32>
    %525 = arith.cmpf ogt, %523, %524 : vector<8x128xf32>
    %526 = arith.extui %525 : vector<8x128xi1> to vector<8x128xi32>
    %527 = arith.sitofp %526 : vector<8x128xi32> to vector<8x128xf32>
    %528 = arith.index_cast %c13_i32 : i32 to index
    %c0_170 = arith.constant 0 : index
    %c0_171 = arith.constant 0 : index
    %529 = vector.load %arg6[%528, %c0_170, %c0_171] : memref<16x8x128xf32, #tpu.memory_space<vmem>>, vector<1x8x128xf32>
    %530 = vector.shape_cast %529 : vector<1x8x128xf32> to vector<8x128xf32>
    %531 = vector.shape_cast %522 : vector<8x128xf32> to vector<1x8x128xf32>
    tpu.vector_store %arg6[%528, %c0_170, %c0_171], %531 {strides = array<i32>} : memref<16x8x128xf32, #tpu.memory_space<vmem>>, vector<1x8x128xf32>,
    %532 = arith.index_cast %c13_i32 : i32 to index
    %c0_172 = arith.constant 0 : index
    %c0_173 = arith.constant 0 : index
    %533 = vector.load %arg7[%532, %c0_172, %c0_173] : memref<16x8x128xf32, #tpu.memory_space<vmem>>, vector<1x8x128xf32>
    %534 = vector.shape_cast %533 : vector<1x8x128xf32> to vector<8x128xf32>
    %535 = vector.shape_cast %527 : vector<8x128xf32> to vector<1x8x128xf32>
    tpu.vector_store %arg7[%532, %c0_172, %c0_173], %535 {strides = array<i32>} : memref<16x8x128xf32, #tpu.memory_space<vmem>>, vector<1x8x128xf32>,
    %c14_i32 = arith.constant 14 : i32
    %536 = arith.index_cast %c14_i32 : i32 to index
    %c0_174 = arith.constant 0 : index
    %c0_175 = arith.constant 0 : index
    %537 = vector.load %arg2[%536, %c0_174, %c0_175] : memref<16x8x128xf32, #tpu.memory_space<vmem>>, vector<1x8x128xf32>
    %538 = vector.shape_cast %537 : vector<1x8x128xf32> to vector<8x128xf32>
    %539 = arith.truncf %527 : vector<8x128xf32> to vector<8x128xbf16>
    %cst_176 = arith.constant dense<0.000000e+00> : vector<8x128xf32>
    %540 = tpu.matmul %539, %11, %cst_176 {dimension_numbers = #tpu.dot_dimension_numbers<[1], [0], [0], [1], [0, 0, 1, 1], [], []>} : vector<8x128xbf16>, vector<128x128xbf16>, vector<8x128xf32> -> vector<8x128xf32>
    %541 = arith.addf %538, %540 : vector<8x128xf32>
    %542 = vector.broadcast %8 : vector<1x128xf32> to vector<8x128xf32>
    %543 = arith.mulf %542, %509 : vector<8x128xf32>
    %544 = vector.broadcast %10 : vector<1x128xf32> to vector<8x128xf32>
    %545 = arith.mulf %544, %527 : vector<8x128xf32>
    %546 = arith.addf %543, %545 : vector<8x128xf32>
    %cst_177 = arith.constant 1.800000e+00 : f32
    %547 = vector.broadcast %cst_177 : f32 to vector<8x128xf32>
    %548 = arith.mulf %547, %546 : vector<8x128xf32>
    %cst_178 = arith.constant 0.00999999977 : f32
    %549 = vector.broadcast %cst_178 : f32 to vector<8x128xf32>
    %550 = arith.addf %549, %548 : vector<8x128xf32>
    %551 = vector.broadcast %4 : vector<1x128xf32> to vector<8x128xf32>
    %552 = arith.mulf %551, %522 : vector<8x128xf32>
    %553 = vector.broadcast %6 : vector<1x128xf32> to vector<8x128xf32>
    %554 = arith.mulf %553, %541 : vector<8x128xf32>
    %555 = arith.addf %552, %554 : vector<8x128xf32>
    %556 = arith.mulf %550, %527 : vector<8x128xf32>
    %cst_179 = arith.constant 1.000000e+00 : f32
    %557 = vector.broadcast %cst_179 : f32 to vector<8x128xf32>
    %558 = arith.mulf %556, %557 : vector<8x128xf32>
    %559 = arith.subf %555, %558 : vector<8x128xf32>
    %560 = arith.subf %559, %550 : vector<8x128xf32>
    %cst_180 = arith.constant 0.000000e+00 : f32
    %561 = vector.broadcast %cst_180 : f32 to vector<8x128xf32>
    %562 = arith.cmpf ogt, %560, %561 : vector<8x128xf32>
    %563 = arith.extui %562 : vector<8x128xi1> to vector<8x128xi32>
    %564 = arith.sitofp %563 : vector<8x128xi32> to vector<8x128xf32>
    %565 = arith.index_cast %c14_i32 : i32 to index
    %c0_181 = arith.constant 0 : index
    %c0_182 = arith.constant 0 : index
    %566 = vector.load %arg6[%565, %c0_181, %c0_182] : memref<16x8x128xf32, #tpu.memory_space<vmem>>, vector<1x8x128xf32>
    %567 = vector.shape_cast %566 : vector<1x8x128xf32> to vector<8x128xf32>
    %568 = vector.shape_cast %559 : vector<8x128xf32> to vector<1x8x128xf32>
    tpu.vector_store %arg6[%565, %c0_181, %c0_182], %568 {strides = array<i32>} : memref<16x8x128xf32, #tpu.memory_space<vmem>>, vector<1x8x128xf32>,
    %569 = arith.index_cast %c14_i32 : i32 to index
    %c0_183 = arith.constant 0 : index
    %c0_184 = arith.constant 0 : index
    %570 = vector.load %arg7[%569, %c0_183, %c0_184] : memref<16x8x128xf32, #tpu.memory_space<vmem>>, vector<1x8x128xf32>
    %571 = vector.shape_cast %570 : vector<1x8x128xf32> to vector<8x128xf32>
    %572 = vector.shape_cast %564 : vector<8x128xf32> to vector<1x8x128xf32>
    tpu.vector_store %arg7[%569, %c0_183, %c0_184], %572 {strides = array<i32>} : memref<16x8x128xf32, #tpu.memory_space<vmem>>, vector<1x8x128xf32>,
    %c15_i32 = arith.constant 15 : i32
    %573 = arith.index_cast %c15_i32 : i32 to index
    %c0_185 = arith.constant 0 : index
    %c0_186 = arith.constant 0 : index
    %574 = vector.load %arg2[%573, %c0_185, %c0_186] : memref<16x8x128xf32, #tpu.memory_space<vmem>>, vector<1x8x128xf32>
    %575 = vector.shape_cast %574 : vector<1x8x128xf32> to vector<8x128xf32>
    %576 = arith.truncf %564 : vector<8x128xf32> to vector<8x128xbf16>
    %cst_187 = arith.constant dense<0.000000e+00> : vector<8x128xf32>
    %577 = tpu.matmul %576, %11, %cst_187 {dimension_numbers = #tpu.dot_dimension_numbers<[1], [0], [0], [1], [0, 0, 1, 1], [], []>} : vector<8x128xbf16>, vector<128x128xbf16>, vector<8x128xf32> -> vector<8x128xf32>
    %578 = arith.addf %575, %577 : vector<8x128xf32>
    %579 = vector.broadcast %8 : vector<1x128xf32> to vector<8x128xf32>
    %580 = arith.mulf %579, %546 : vector<8x128xf32>
    %581 = vector.broadcast %10 : vector<1x128xf32> to vector<8x128xf32>
    %582 = arith.mulf %581, %564 : vector<8x128xf32>
    %583 = arith.addf %580, %582 : vector<8x128xf32>
    %cst_188 = arith.constant 1.800000e+00 : f32
    %584 = vector.broadcast %cst_188 : f32 to vector<8x128xf32>
    %585 = arith.mulf %584, %583 : vector<8x128xf32>
    %cst_189 = arith.constant 0.00999999977 : f32
    %586 = vector.broadcast %cst_189 : f32 to vector<8x128xf32>
    %587 = arith.addf %586, %585 : vector<8x128xf32>
    %588 = vector.broadcast %4 : vector<1x128xf32> to vector<8x128xf32>
    %589 = arith.mulf %588, %559 : vector<8x128xf32>
    %590 = vector.broadcast %6 : vector<1x128xf32> to vector<8x128xf32>
    %591 = arith.mulf %590, %578 : vector<8x128xf32>
    %592 = arith.addf %589, %591 : vector<8x128xf32>
    %593 = arith.mulf %587, %564 : vector<8x128xf32>
    %cst_190 = arith.constant 1.000000e+00 : f32
    %594 = vector.broadcast %cst_190 : f32 to vector<8x128xf32>
    %595 = arith.mulf %593, %594 : vector<8x128xf32>
    %596 = arith.subf %592, %595 : vector<8x128xf32>
    %597 = arith.subf %596, %587 : vector<8x128xf32>
    %cst_191 = arith.constant 0.000000e+00 : f32
    %598 = vector.broadcast %cst_191 : f32 to vector<8x128xf32>
    %599 = arith.cmpf ogt, %597, %598 : vector<8x128xf32>
    %600 = arith.extui %599 : vector<8x128xi1> to vector<8x128xi32>
    %601 = arith.sitofp %600 : vector<8x128xi32> to vector<8x128xf32>
    %602 = arith.index_cast %c15_i32 : i32 to index
    %c0_192 = arith.constant 0 : index
    %c0_193 = arith.constant 0 : index
    %603 = vector.load %arg6[%602, %c0_192, %c0_193] : memref<16x8x128xf32, #tpu.memory_space<vmem>>, vector<1x8x128xf32>
    %604 = vector.shape_cast %603 : vector<1x8x128xf32> to vector<8x128xf32>
    %605 = vector.shape_cast %596 : vector<8x128xf32> to vector<1x8x128xf32>
    tpu.vector_store %arg6[%602, %c0_192, %c0_193], %605 {strides = array<i32>} : memref<16x8x128xf32, #tpu.memory_space<vmem>>, vector<1x8x128xf32>,
    %606 = arith.index_cast %c15_i32 : i32 to index
    %c0_194 = arith.constant 0 : index
    %c0_195 = arith.constant 0 : index
    %607 = vector.load %arg7[%606, %c0_194, %c0_195] : memref<16x8x128xf32, #tpu.memory_space<vmem>>, vector<1x8x128xf32>
    %608 = vector.shape_cast %607 : vector<1x8x128xf32> to vector<8x128xf32>
    %609 = vector.shape_cast %601 : vector<8x128xf32> to vector<1x8x128xf32>
    tpu.vector_store %arg7[%606, %c0_194, %c0_195], %609 {strides = array<i32>} : memref<16x8x128xf32, #tpu.memory_space<vmem>>, vector<1x8x128xf32>,
    %c16_i32 = arith.constant 16 : i32
    %c0_196 = arith.constant 0 : index
    %c0_197 = arith.constant 0 : index
    %c0_198 = arith.constant 0 : index
    %610 = vector.load %arg8[%c0_196, %c0_197, %c0_198] : memref<3x8x128xf32, #tpu.memory_space<vmem>>, vector<1x8x128xf32>
    %611 = vector.shape_cast %610 : vector<1x8x128xf32> to vector<8x128xf32>
    %612 = vector.shape_cast %596 : vector<8x128xf32> to vector<1x8x128xf32>
    tpu.vector_store %arg8[%c0_196, %c0_197, %c0_198], %612 {strides = array<i32>} : memref<3x8x128xf32, #tpu.memory_space<vmem>>, vector<1x8x128xf32>,
    %c1_199 = arith.constant 1 : index
    %c0_200 = arith.constant 0 : index
    %c0_201 = arith.constant 0 : index
    %613 = vector.load %arg8[%c1_199, %c0_200, %c0_201] : memref<3x8x128xf32, #tpu.memory_space<vmem>>, vector<1x8x128xf32>
    %614 = vector.shape_cast %613 : vector<1x8x128xf32> to vector<8x128xf32>
    %615 = vector.shape_cast %601 : vector<8x128xf32> to vector<1x8x128xf32>
    tpu.vector_store %arg8[%c1_199, %c0_200, %c0_201], %615 {strides = array<i32>} : memref<3x8x128xf32, #tpu.memory_space<vmem>>, vector<1x8x128xf32>,
    %c2_202 = arith.constant 2 : index
    %c0_203 = arith.constant 0 : index
    %c0_204 = arith.constant 0 : index
    %616 = vector.load %arg8[%c2_202, %c0_203, %c0_204] : memref<3x8x128xf32, #tpu.memory_space<vmem>>, vector<1x8x128xf32>
    %617 = vector.shape_cast %616 : vector<1x8x128xf32> to vector<8x128xf32>
    %618 = vector.shape_cast %583 : vector<8x128xf32> to vector<1x8x128xf32>
    tpu.vector_store %arg8[%c2_202, %c0_203, %c0_204], %618 {strides = array<i32>} : memref<3x8x128xf32, #tpu.memory_space<vmem>>, vector<1x8x128xf32>,
    return
  }
  func.func @transform_0(%arg0: i32, %arg1: i32) -> (i32, i32, i32) {
    %c0_i32 = arith.constant 0 : i32
    %c0_i32_0 = arith.constant 0 : i32
    return %arg1, %arg0, %c0_i32 : i32, i32, i32
  }
  func.func @transform_1(%arg0: i32, %arg1: i32) -> (i32, i32, i32) {
    %c0_i32 = arith.constant 0 : i32
    %c0_i32_0 = arith.constant 0 : i32
    %c0_i32_1 = arith.constant 0 : i32
    return %c0_i32, %arg0, %c0_i32_0 : i32, i32, i32
  }
  func.func @transform_2(%arg0: i32, %arg1: i32) -> (i32, i32) {
    %c0_i32 = arith.constant 0 : i32
    %c0_i32_0 = arith.constant 0 : i32
    %c0_i32_1 = arith.constant 0 : i32
    return %c0_i32, %c0_i32_0 : i32, i32
  }
  func.func @transform_3(%arg0: i32, %arg1: i32) -> (i32, i32, i32) {
    %c0_i32 = arith.constant 0 : i32
    %c0_i32_0 = arith.constant 0 : i32
    %c0_i32_1 = arith.constant 0 : i32
    %c0_i32_2 = arith.constant 0 : i32
    return %c0_i32, %c0_i32_0, %c0_i32_1 : i32, i32, i32
  }
  func.func @transform_4(%arg0: i32, %arg1: i32) -> (i32, i32, i32) {
    %c0_i32 = arith.constant 0 : i32
    %c0_i32_0 = arith.constant 0 : i32
    return %arg1, %arg0, %c0_i32 : i32, i32, i32
  }
  func.func @transform_5(%arg0: i32, %arg1: i32) -> (i32, i32, i32) {
    %c0_i32 = arith.constant 0 : i32
    %c0_i32_0 = arith.constant 0 : i32
    return %arg1, %arg0, %c0_i32 : i32, i32, i32
  }
  func.func @transform_6(%arg0: i32, %arg1: i32) -> (i32, i32, i32) {
    %c0_i32 = arith.constant 0 : i32
    %c0_i32_0 = arith.constant 0 : i32
    %c0_i32_1 = arith.constant 0 : i32
    return %c0_i32, %arg0, %c0_i32_0 : i32, i32, i32
  }
}

</mosaic_0001>

<bundles_post_ra>
// kernel: spike_rnn_alif_forward.2
= control target key start
LH: loop header
LB: loop body
LE: loop exit
PB: predicated region body
PF: predicated region fallthrough
CT: control target
= control target key end

     0   :  { %s483_s1 = inlined_call_operand.vmem [shape: bf16[128,128], index: 1, kind: input, shape index: {}]   ;;  %s484_s0 = inlined_call_operand.vmem [shape: bf16[128,128], index: 0, kind: input, shape index: {}]   ;;  %s485_s2 = inlined_call_operand.vmem [shape: f32[1,128], index: 2, kind: input, shape index: {}]   ;;  %s486_s3 = inlined_call_operand.vmem [shape: f32[128,128], index: 3, kind: output, shape index: {}]  }
   0x1   :  { %v348_v0 = vld [vmem:[%s483_s1] sm:$0xff]   ;;  %v349_v1 = vld [vmem:[%s483_s1 + $0x8] sm:$0xff]   ;;  %v350_v2 = vld [vmem:[%s483_s1 + $0x10] sm:$0xff]  }
   0x2   :  { %300 = vmatprep.subr.bf16.mxu0 %v348_v0  ;;  %332 = vmatprep.subr.bf16.mxu1 %v348_v0  ;;  %v351_v3 = vld [vmem:[%s483_s1 + $0x18] sm:$0xff]   ;;  %v356_v4 = vld [vmem:[%s484_s0] sm:$0xff]   ;;  %v353_v7 = vld [vmem:[%s483_s1 + $0x28] sm:$0xff]  }
   0x3   :  { %301 = vmatpush3.bf16.msra.mxu0 %v348_v0  ;;  %340 = vmatpush3.bf16.msra.mxu1 %v348_v0  ;;  %v357_v5 = vld [vmem:[%s484_s0 + $0x20] sm:$0xff]   ;;  %v354_v8 = vld [vmem:[%s483_s1 + $0x30] sm:$0xff]   ;;  %v355_v9 = vld [vmem:[%s483_s1 + $0x38] sm:$0xff]  }
   0x4   :  { %302 = vmatprep.subr.bf16.mxu0 %v349_v1  ;;  %333 = vmatprep.subr.bf16.mxu1 %v349_v1  ;;  %v352_v6 = vld [vmem:[%s483_s1 + $0x20] sm:$0xff]   ;;  %v358_v10 = vld [vmem:[%s484_s0 + $0x8] sm:$0xff]   ;;  %v360_v12 = vld [vmem:[%s484_s0 + $0x10] sm:$0xff]  }
   0x5   :  { %316 = vmatprep.mubr.bf16.mxu0 %v356_v4  ;;  %324 = vmatprep.mubr.bf16.mxu1 %v357_v5  ;;  %v359_v11 = vld [vmem:[%s484_s0 + $0x28] sm:$0xff]   ;;  %v361_v13 = vld [vmem:[%s484_s0 + $0x30] sm:$0xff]   ;;  %v362_v14 = vld [vmem:[%s484_s0 + $0x18] sm:$0xff]  }
   0x6   :  { %v363_v15 = vld [vmem:[%s484_s0 + $0x38] sm:$0xff]   ;;  %v267_v16 = vld [vmem:[%s485_s2] ss:$0 sm:$0xff] }
   0x7   :  { %303 = vmatpush3.bf16.msra.mxu0 %v349_v1  ;;  %341 = vmatpush3.bf16.msra.mxu1 %v349_v1 }
   0x8   :  { %304 = vmatprep.subr.bf16.mxu0 %v350_v2  ;;  %334 = vmatprep.subr.bf16.mxu1 %v350_v2 }
   0xb   :  { %305 = vmatpush3.bf16.msra.mxu0 %v350_v2  ;;  %342 = vmatpush3.bf16.msra.mxu1 %v350_v2 }
   0xc   :  { %306 = vmatprep.subr.bf16.mxu0 %v351_v3  ;;  %335 = vmatprep.subr.bf16.mxu1 %v351_v3 }
   0xf   :  { %307 = vmatpush3.bf16.msra.mxu0 %v351_v3  ;;  %343 = vmatpush3.bf16.msra.mxu1 %v351_v3 }
  0x10   :  { %308 = vmatprep.subr.bf16.mxu0 %v352_v6  ;;  %336 = vmatprep.subr.bf16.mxu1 %v352_v6 }
  0x13   :  { %309 = vmatpush3.bf16.msra.mxu0 %v352_v6  ;;  %344 = vmatpush3.bf16.msra.mxu1 %v352_v6 }
  0x14   :  { %310 = vmatprep.subr.bf16.mxu0 %v353_v7  ;;  %337 = vmatprep.subr.bf16.mxu1 %v353_v7 }
  0x17   :  { %311 = vmatpush3.bf16.msra.mxu0 %v353_v7  ;;  %345 = vmatpush3.bf16.msra.mxu1 %v353_v7 }
  0x18   :  { %312 = vmatprep.subr.bf16.mxu0 %v354_v8  ;;  %338 = vmatprep.subr.bf16.mxu1 %v354_v8 }
  0x1b   :  { %313 = vmatpush3.bf16.msra.mxu0 %v354_v8  ;;  %346 = vmatpush3.bf16.msra.mxu1 %v354_v8 }
  0x1c   :  { %314 = vmatprep.subr.bf16.mxu0 %v355_v9  ;;  %339 = vmatprep.subr.bf16.mxu1 %v355_v9 }
  0x1f   :  { %315 = vmatpush3.bf16.msra.mxu0 %v355_v9  ;;  %347 = vmatpush3.bf16.msra.mxu1 %v355_v9 }
  0x22   :  { %317 = vmatmul.mubr.bf16.vlgmr.msra.gmra.mrb[0].mxu0 %v358_v10  ;;  %325 = vmatmul.mubr.bf16.vlgmr.msra.gmra.mrb[0].mxu1 %v359_v11 }
  0x23   :  { %320 = vmatprep.mubr.bf16.mxu0 %v360_v12  ;;  %328 = vmatprep.mubr.bf16.mxu1 %v361_v13 }
  0x2a   :  { %321 = vmatmul.mubr.bf16.gmra.mrb[4].mxu0 %v362_v14  ;;  %329 = vmatmul.mubr.bf16.gmra.mrb[4].mxu1 %v363_v15 }
  0xf5   :  { %v318_v17 = vpop.f32.mrb[0].mxu0  ;;  %v326_v18 = vpop.f32.mrb[0].mxu1 }
  0xf6   :  { %v193_v19 = vadd.f32 %v318_v17, %v267_v16  ;;  %v225_v20 = vadd.f32 %v326_v18, %v267_v16  ;;  %v184_v21 = vpop.f32.mrb[1].mxu0  ;;  %v216_v22 = vpop.f32.mrb[1].mxu1 }
  0xf7   :  { %v185_v23 = vadd.f32 %v267_v16, %v184_v21  ;;  %v217_v24 = vadd.f32 %v267_v16, %v216_v22  ;;  %v319_v25 = vpop.f32.mrb[2].mxu0  ;;  %v327_v26 = vpop.f32.mrb[2].mxu1 }
  0xf8   :  { %249 = vst [vmem:[%s486_s3 + $0x10] sm:$0xff] %v193_v19  ;;  %257 = vst [vmem:[%s486_s3 + $0x50] sm:$0xff] %v225_v20  ;;  %v196_v27 = vadd.f32 %v319_v25, %v267_v16  ;;  %v228_v28 = vadd.f32 %v327_v26, %v267_v16  ;;  %v187_v29 = vpop.f32.mrb[3].mxu0  ;;  %v219_v30 = vpop.f32.mrb[3].mxu1 }
  0xf9   :  { %247 = vst [vmem:[%s486_s3] sm:$0xff] %v185_v23  ;;  %255 = vst [vmem:[%s486_s3 + $0x40] sm:$0xff] %v217_v24  ;;  %v188_v31 = vadd.f32 %v267_v16, %v187_v29  ;;  %v220_v32 = vadd.f32 %v267_v16, %v219_v30 }
  0xfa   :  { %250 = vst [vmem:[%s486_s3 + $0x18] sm:$0xff] %v196_v27  ;;  %258 = vst [vmem:[%s486_s3 + $0x58] sm:$0xff] %v228_v28 }
  0xfb   :  { %248 = vst [vmem:[%s486_s3 + $0x8] sm:$0xff] %v188_v31  ;;  %256 = vst [vmem:[%s486_s3 + $0x48] sm:$0xff] %v220_v32 }
  0xfd   :  { %v322_v33 = vpop.f32.mrb[4].mxu0  ;;  %v330_v34 = vpop.f32.mrb[4].mxu1 }
  0xfe   :  { %v209_v35 = vadd.f32 %v322_v33, %v267_v16  ;;  %v241_v36 = vadd.f32 %v330_v34, %v267_v16  ;;  %v200_v37 = vpop.f32.mrb[5].mxu0  ;;  %v232_v38 = vpop.f32.mrb[5].mxu1 }
  0xff   :  { %v201_v39 = vadd.f32 %v267_v16, %v200_v37  ;;  %v233_v40 = vadd.f32 %v267_v16, %v232_v38  ;;  %v323_v41 = vpop.f32.mrb[6].mxu0  ;;  %v331_v42 = vpop.f32.mrb[6].mxu1 }
 0x100   :  { %253 = vst [vmem:[%s486_s3 + $0x30] sm:$0xff] %v209_v35  ;;  %261 = vst [vmem:[%s486_s3 + $0x70] sm:$0xff] %v241_v36  ;;  %v212_v43 = vadd.f32 %v323_v41, %v267_v16  ;;  %v244_v44 = vadd.f32 %v331_v42, %v267_v16  ;;  %v203_v45 = vpop.f32.mrb[7].mxu0  ;;  %v235_v46 = vpop.f32.mrb[7].mxu1 }
 0x101   :  { %251 = vst [vmem:[%s486_s3 + $0x20] sm:$0xff] %v201_v39  ;;  %259 = vst [vmem:[%s486_s3 + $0x60] sm:$0xff] %v233_v40  ;;  %v204_v47 = vadd.f32 %v267_v16, %v203_v45  ;;  %v236_v48 = vadd.f32 %v267_v16, %v235_v46 }
 0x102   :  { %254 = vst [vmem:[%s486_s3 + $0x38] sm:$0xff] %v212_v43  ;;  %262 = vst [vmem:[%s486_s3 + $0x78] sm:$0xff] %v244_v44 }
 0x103   :  { %252 = vst [vmem:[%s486_s3 + $0x28] sm:$0xff] %v204_v47  ;;  %260 = vst [vmem:[%s486_s3 + $0x68] sm:$0xff] %v236_v48 }

// kernel: spike_rnn_alif_forward.3
= control target key start
LH: loop header
LB: loop body
LE: loop exit
PB: predicated region body
PF: predicated region fallthrough
CT: control target
= control target key end

     0   :  { %12 = vsyncpa [#allocation3], 0  ;;  %s2462_s0 = inlined_call_operand.vmem [shape: f32[16,8,128], index: 0, kind: input, shape index: {}]   ;;  %s2463_s1 = inlined_call_operand.hbm [shape: f32[3,8,128], index: 1, kind: input, shape index: {}, may-alias: {1,6}]   ;;  %s2464_s2 = inlined_call_operand.vmem [shape: bf16[128,128], index: 2, kind: input, shape index: {}]   ;;  %s2465_s3 = inlined_call_operand.vmem [shape: f32[4,1,128], index: 3, kind: input, shape index: {}]   ;;  %s2466_s4 = inlined_call_operand.hbm [shape: f32[16,8,128], index: 4, kind: output, shape index: {0}]   ;;  %s2467_s5 = inlined_call_operand.hbm [shape: f32[16,8,128], index: 5, kind: output, shape index: {1}]   ;;  %s2468_s6 = inlined_call_operand.hbm [shape: f32[3,8,128], index: 6, kind: output, shape index: {2}, may-alias: {1,6}]  }
   0x1   :  { %13 = vsyncpa [#allocation4], 0 }
   0x2   :  { %14 = vsyncpa [#allocation7], 0  ;;  %s1850_s21 = smov [#allocation2]   ;;  %s1756_s25 = scalar_lea.hbm %s2463_s1, 384 }
   0x3   :  { %s22_s22 = sshll.u32 %s1850_s21, 4  ;;  %p1757_p0 = scmp.ne.s32.totalorder %s2463_s1, %s1756_s25  ;;  %s23_s22 = int_to_ptr.vmem [resolvable:$true] %s22_s22 }
   0x4   :  { %p1760_p1 = scmp.lt.u32.totalorder %s1756_s25, %s2463_s1 }
   0x6   :  { %p1762_p2 = pnand %p1760_p1, %p1757_p0 }
   0x8   :  { %1765 = shalt.err (!%p1762_p2)
}
   0x9   :  { %s1766_s30 = scalar_lea.vmem %s23_s22, 384  ;;  %p1771_p4 = scmp.lt.s32.totalorder %s23_s22, %s23_s22 }
   0xa   :  { %p1767_p3 = scmp.ne.s32.totalorder %s23_s22, %s1766_s30  ;;  %p1772_p5 = scmp.lt.s32.totalorder %s1766_s30, %s1766_s30 }
   0xc   :  { %p1773_p6 = por %p1772_p5, %p1771_p4 }
   0xe   :  { %p1774_p7 = pnand %p1773_p6, %p1767_p3 }
  0x10   :  { %1777 = shalt.err (!%p1774_p7)
}
  0x11   :  { %s1851_s7 = smov 128   ;;  %s1852_s8 = smov 8  }
  0x12   :  { %28 = dma.hbm_to_vmem [thread:$0]  %s2463_s1, 384, %s23_s22, [#allocation3], %s1851_s7, %s1851_s7, %s1852_s8  }
  0x13   :  { %1844 = dma.done.wait [#allocation3], 384  }
  0x14   :  { %1845 = vsyncadd [#allocation3], 4294966912  ;;  %v1853_v0 = vmov 0.0   ;;  %vm1854_vm0 = vmmov 0   ;;  %v1918_v1 = vld [vmem:[%s2464_s2] sm:$0xff]   ;;  %v1924_v2 = vld [vmem:[%s2464_s2 + $0x8] sm:$0xff]  }
  0x15   :  { %1407 = vmatprep.subr.bf16.mxu0 %v1853_v0  ;;  %1423 = vmatprep.mubr.msk.bf16.mxu0 %vm1854_vm0, %v1853_v0  ;;  %v1933_v3 = vld [vmem:[%s2464_s2 + $0x10] sm:$0xff]   ;;  %v1942_v4 = vld [vmem:[%s2464_s2 + $0x18] sm:$0xff]   ;;  %v1951_v5 = vld [vmem:[%s2464_s2 + $0x20] sm:$0xff]   ;;  %v1855_v36 = vmov 1.0|1.0   ;;  %s1856_s19 = smov [#allocation5]  }
  0x16   :  { %1427 = vmatprep.subr.bf16.mxu1 %v1853_v0  ;;  %1443 = vmatprep.mubr.msk.bf16.mxu1 %vm1854_vm0, %v1853_v0  ;;  %v1960_v6 = vld [vmem:[%s2464_s2 + $0x28] sm:$0xff]   ;;  %v1969_v7 = vld [vmem:[%s2464_s2 + $0x30] sm:$0xff]   ;;  %v1978_v8 = vld [vmem:[%s2464_s2 + $0x38] sm:$0xff]   ;;  %s1144_s20 = sshll.u32 %s1856_s19, 4  ;;  %s1857_s21 = smov [#allocation6]   ;;  %s1145_s20 = int_to_ptr.vmem [resolvable:$true] %s1144_s20 }
  0x17   :  { %1408 = vmatpush3.bf16.msra.mxu0 %v1918_v1  ;;  %1428 = vmatpush3.bf16.msra.mxu1 %v1918_v1  ;;  %v42_v9 = vld [vmem:[#allocation2 + $0x8] sm:$0xff]  ;;  %v2008_v11 = vld [vmem:[%s2465_s3 + $0x3] ss:$0 sm:$0xff]  ;;  %v43_v12 = vld [vmem:[#allocation2 + $0x10] sm:$0xff]  ;;  %s1156_s22 = sshll.u32 %s1857_s21, 4  ;;  %s1858_s23 = smov [#allocation8]   ;;  %s1157_s22 = int_to_ptr.vmem [resolvable:$true] %s1156_s22 }
  0x18   :  { %1409 = vmatprep.subr.bf16.mxu0 %v1853_v0  ;;  %1429 = vmatprep.subr.bf16.mxu1 %v1853_v0  ;;  %v76_v10 = vpack.c.bf16 %v42_v9, %v42_v9  ;;  %v2013_v13 = vld [vmem:[%s2465_s3 + $0x2] ss:$0 sm:$0xff]  ;;  %v179_v14 = vmul.f32 %v2008_v11, %v42_v9  ;;  %v2020_v19 = vld [vmem:[%s2465_s3] ss:$0 sm:$0xff]  ;;  %v2028_v22 = vld [vmem:[%s2465_s3 + $0x1] ss:$0 sm:$0xff]  ;;  %p1783_p9 = scmp.lt.s32.totalorder %s1145_s20, %s1145_s20 }
  0x19   :  { %v172_v15 = vmul.f32 %v2013_v13, %v43_v12  ;;  %v41_v18 = vld [vmem:[#allocation2] sm:$0xff]  ;;  %v1203_v42 = vld [vmem:[%s2462_s0 + $0x8] sm:$0xff]  ;;  %v1207_v60 = vld [vmem:[%s2462_s0 + $0x10] sm:$0xff]  ;;  %s1168_s24 = sshll.u32 %s1858_s23, 4  ;;  %s2425_s24 = int_to_ptr.vmem [resolvable:$true] %s1168_s24 }
  0x1a   :  { %v75_v20 = vld [vmem:[%s2462_s0] sm:$0xff]  ;;  %v189_v25 = vmul.f32 %v2020_v19, %v41_v18 }
  0x1b   :  { %1410 = vmatpush3.bf16.msra.mxu0 %v1924_v2  ;;  %1430 = vmatpush3.bf16.msra.mxu1 %v1924_v2  ;;  %v180_v16 = vadd.f32 %v179_v14, %v172_v15 }
  0x1c   :  { %1411 = vmatprep.subr.bf16.mxu0 %v1853_v0  ;;  %1431 = vmatprep.subr.bf16.mxu1 %v1853_v0 }
  0x1d   :  { %v181_v17 = vmul.f32 1.8, %v180_v16  ;;  %v250_v34 = vmul.f32 %v2013_v13, %v180_v16 }
  0x1f   :  { %1412 = vmatpush3.bf16.msra.mxu0 %v1933_v3  ;;  %1432 = vmatpush3.bf16.msra.mxu1 %v1933_v3  ;;  %v182_v21 = vadd.f32 0.01, %v181_v17 }
  0x20   :  { %1413 = vmatprep.subr.bf16.mxu0 %v1853_v0  ;;  %1433 = vmatprep.subr.bf16.mxu1 %v1853_v0 }
  0x21   :  { %v198_v29 = vmul.f32 %v182_v21, %v42_v9 }
  0x23   :  { %1414 = vmatpush3.bf16.msra.mxu0 %v1942_v4  ;;  %1434 = vmatpush3.bf16.msra.mxu1 %v1942_v4 }
  0x24   :  { %1415 = vmatprep.subr.bf16.mxu0 %v1853_v0  ;;  %1435 = vmatprep.subr.bf16.mxu1 %v1853_v0 }
  0x27   :  { %1416 = vmatpush3.bf16.msra.mxu0 %v1951_v5  ;;  %1436 = vmatpush3.bf16.msra.mxu1 %v1951_v5 }
  0x28   :  { %1417 = vmatprep.subr.bf16.mxu0 %v1853_v0  ;;  %1437 = vmatprep.subr.bf16.mxu1 %v1853_v0 }
  0x2b   :  { %1418 = vmatpush3.bf16.msra.mxu0 %v1960_v6  ;;  %1438 = vmatpush3.bf16.msra.mxu1 %v1960_v6 }
  0x2c   :  { %1419 = vmatprep.subr.bf16.mxu0 %v1853_v0  ;;  %1439 = vmatprep.subr.bf16.mxu1 %v1853_v0 }
  0x2f   :  { %1420 = vmatpush3.bf16.msra.mxu0 %v1969_v7  ;;  %1440 = vmatpush3.bf16.msra.mxu1 %v1969_v7 }
  0x30   :  { %1421 = vmatprep.subr.bf16.mxu0 %v1853_v0  ;;  %1441 = vmatprep.subr.bf16.mxu1 %v1853_v0 }
  0x33   :  { %1422 = vmatpush3.bf16.msra.mxu0 %v1978_v8  ;;  %1442 = vmatpush3.bf16.msra.mxu1 %v1978_v8 }
  0x34   :  { %1447 = vmatprep.subr.bf16.mxu0 %v1853_v0  ;;  %1467 = vmatprep.subr.bf16.mxu1 %v1853_v0 }
  0x36   :  { %1424 = vmatmul.mubr.bf16.vlgmr.msra.gmra.mrb[0].mxu0 %v76_v10 }
  0x37   :  { %1448 = vmatpush3.bf16.msra.mxu0 %v1918_v1  ;;  %1463 = vmatprep.mubr.msk.bf16.mxu0 %vm1854_vm0, %v1853_v0 }
  0x38   :  { %1449 = vmatprep.subr.bf16.mxu0 %v1853_v0 }
  0x3b   :  { %1450 = vmatpush3.bf16.msra.mxu0 %v1924_v2 }
  0x3c   :  { %1451 = vmatprep.subr.bf16.mxu0 %v1853_v0 }
  0x3f   :  { %1452 = vmatpush3.bf16.msra.mxu0 %v1933_v3 }
  0x40   :  { %1453 = vmatprep.subr.bf16.mxu0 %v1853_v0 }
  0x43   :  { %1454 = vmatpush3.bf16.msra.mxu0 %v1942_v4 }
  0x44   :  { %1455 = vmatprep.subr.bf16.mxu0 %v1853_v0 }
  0x47   :  { %1456 = vmatpush3.bf16.msra.mxu0 %v1951_v5 }
  0x48   :  { %1457 = vmatprep.subr.bf16.mxu0 %v1853_v0 }
  0x4b   :  { %1458 = vmatpush3.bf16.msra.mxu0 %v1960_v6 }
  0x4c   :  { %1459 = vmatprep.subr.bf16.mxu0 %v1853_v0 }
  0x4f   :  { %1460 = vmatpush3.bf16.msra.mxu0 %v1969_v7 }
  0x50   :  { %1461 = vmatprep.subr.bf16.mxu0 %v1853_v0 }
  0x53   :  { %1462 = vmatpush3.bf16.msra.mxu0 %v1978_v8 }
  0x54   :  { %1487 = vmatprep.subr.bf16.mxu0 %v1853_v0 }
 0x109   :  { %v159_v23 = vpop.f32.mrb[0].mxu0 }
 0x10a   :  { %v165_v24 = vadd.f32 %v159_v23, %v75_v20  ;;  %v1425_v26 = vpop.f32.mrb[1].mxu0 }
 0x10b   :  { %v162_v27 = vpop.f32.mrb[2].mxu0 }
 0x10c   :  { %v196_v28 = vmul.f32 %v2028_v22, %v165_v24  ;;  %v1426_v30 = vpop.f32.mrb[3].mxu0  ;;  %v1211_v27 = vld [vmem:[%s2462_s0 + $0x18] sm:$0xff] }
 0x10e   :  { %v197_v31 = vadd.f32 %v196_v28, %v189_v25 }
 0x110   :  { %v199_v32 = vsub.f32 %v197_v31, %v198_v29 }
 0x112   :  { %204 = vst [vmem:[#allocation5] sm:$0xff] %v199_v32  ;;  %v200_v33 = vsub.f32 %v199_v32, %v182_v21  ;;  %v255_v47 = vmul.f32 %v2020_v19, %v199_v32 }
 0x114   :  { %vm201_vm1 = vcmp.gt.f32.partialorder %v200_v33, 0.0 }
 0x115   :  { %v1202_v35 = vsel %vm201_vm1, 1.0, %v1853_v0  ;;  %vm1204_vm2 = vmpackc.low %vm201_vm1, %vm201_vm1 }
 0x116   :  { %205 = vst [vmem:[#allocation6] sm:$0xff] %v1202_v35  ;;  %1444 = vmatmul.mubr.msk.bf16.vlgmr.msra.gmra.mrb[0].mxu1 %vm1204_vm2, %v1855_v36  ;;  %v251_v37 = vmul.f32 %v1202_v35, %v2008_v11 }
 0x117   :  { %1468 = vmatpush3.bf16.msra.mxu1 %v1918_v1  ;;  %1483 = vmatprep.mubr.msk.bf16.mxu1 %vm1854_vm0, %v1853_v0 }
 0x118   :  { %v252_v38 = vadd.f32 %v251_v37, %v250_v34  ;;  %1469 = vmatprep.subr.bf16.mxu1 %v1853_v0 }
 0x11a   :  { %v253_v39 = vmul.f32 1.8, %v252_v38  ;;  %v312_v54 = vmul.f32 %v2013_v13, %v252_v38 }
 0x11b   :  { %1470 = vmatpush3.bf16.msra.mxu1 %v1924_v2 }
 0x11c   :  { %v254_v40 = vadd.f32 0.01, %v253_v39  ;;  %1471 = vmatprep.subr.bf16.mxu1 %v1853_v0 }
 0x11e   :  { %v258_v41 = vmul.f32 %v1202_v35, %v254_v40 }
 0x11f   :  { %1472 = vmatpush3.bf16.msra.mxu1 %v1933_v3 }
 0x120   :  { %1473 = vmatprep.subr.bf16.mxu1 %v1853_v0 }
 0x123   :  { %1474 = vmatpush3.bf16.msra.mxu1 %v1942_v4 }
 0x124   :  { %1475 = vmatprep.subr.bf16.mxu1 %v1853_v0 }
 0x127   :  { %1476 = vmatpush3.bf16.msra.mxu1 %v1951_v5 }
 0x128   :  { %1477 = vmatprep.subr.bf16.mxu1 %v1853_v0 }
 0x12b   :  { %1478 = vmatpush3.bf16.msra.mxu1 %v1960_v6 }
 0x12c   :  { %1479 = vmatprep.subr.bf16.mxu1 %v1853_v0 }
 0x12f   :  { %1480 = vmatpush3.bf16.msra.mxu1 %v1969_v7 }
 0x130   :  { %1481 = vmatprep.subr.bf16.mxu1 %v1853_v0 }
 0x133   :  { %1482 = vmatpush3.bf16.msra.mxu1 %v1978_v8 }
 0x134   :  { %1507 = vmatprep.subr.bf16.mxu1 %v1853_v0 }
 0x1e9   :  { %v243_v43 = vpop.f32.mrb[0].mxu1 }
 0x1ea   :  { %v249_v44 = vadd.f32 %v1203_v42, %v243_v43  ;;  %v1445_v45 = vpop.f32.mrb[1].mxu1 }
 0x1eb   :  { %v246_v46 = vpop.f32.mrb[2].mxu1 }
 0x1ec   :  { %v256_v48 = vmul.f32 %v2028_v22, %v249_v44  ;;  %v1446_v49 = vpop.f32.mrb[3].mxu1  ;;  %v1215_v46 = vld [vmem:[%s2462_s0 + $0x20] sm:$0xff] }
 0x1ee   :  { %v257_v50 = vadd.f32 %v256_v48, %v255_v47 }
 0x1f0   :  { %v259_v51 = vsub.f32 %v257_v50, %v258_v41 }
 0x1f2   :  { %265 = vst [vmem:[#allocation5 + $0x8] sm:$0xff] %v259_v51  ;;  %v260_v52 = vsub.f32 %v259_v51, %v254_v40  ;;  %v317_v10 = vmul.f32 %v2020_v19, %v259_v51 }
 0x1f4   :  { %vm261_vm3 = vcmp.gt.f32.partialorder %v260_v52, 0.0 }
 0x1f5   :  { %v1206_v53 = vsel %vm261_vm3, 1.0, %v1853_v0  ;;  %vm1208_vm4 = vmpackc.low %vm261_vm3, %vm261_vm3 }
 0x1f6   :  { %267 = vst [vmem:[#allocation6 + $0x8] sm:$0xff] %v1206_v53  ;;  %1464 = vmatmul.mubr.msk.bf16.vlgmr.msra.gmra.mrb[4].mxu0 %vm1208_vm4, %v1855_v36  ;;  %v313_v55 = vmul.f32 %v1206_v53, %v2008_v11 }
 0x1f7   :  { %1488 = vmatpush3.bf16.msra.mxu0 %v1918_v1  ;;  %1503 = vmatprep.mubr.msk.bf16.mxu0 %vm1854_vm0, %v1853_v0 }
 0x1f8   :  { %v314_v56 = vadd.f32 %v313_v55, %v312_v54  ;;  %1489 = vmatprep.subr.bf16.mxu0 %v1853_v0 }
 0x1fa   :  { %v315_v57 = vmul.f32 1.8, %v314_v56  ;;  %v374_v20 = vmul.f32 %v2013_v13, %v314_v56 }
 0x1fb   :  { %1490 = vmatpush3.bf16.msra.mxu0 %v1924_v2 }
 0x1fc   :  { %v316_v58 = vadd.f32 0.01, %v315_v57  ;;  %1491 = vmatprep.subr.bf16.mxu0 %v1853_v0 }
 0x1fe   :  { %v320_v59 = vmul.f32 %v1206_v53, %v316_v58 }
 0x1ff   :  { %1492 = vmatpush3.bf16.msra.mxu0 %v1933_v3 }
 0x200   :  { %1493 = vmatprep.subr.bf16.mxu0 %v1853_v0 }
 0x203   :  { %1494 = vmatpush3.bf16.msra.mxu0 %v1942_v4 }
 0x204   :  { %1495 = vmatprep.subr.bf16.mxu0 %v1853_v0 }
 0x207   :  { %1496 = vmatpush3.bf16.msra.mxu0 %v1951_v5 }
 0x208   :  { %1497 = vmatprep.subr.bf16.mxu0 %v1853_v0 }
 0x20b   :  { %1498 = vmatpush3.bf16.msra.mxu0 %v1960_v6 }
 0x20c   :  { %1499 = vmatprep.subr.bf16.mxu0 %v1853_v0 }
 0x20f   :  { %1500 = vmatpush3.bf16.msra.mxu0 %v1969_v7 }
 0x210   :  { %1501 = vmatprep.subr.bf16.mxu0 %v1853_v0 }
 0x213   :  { %1502 = vmatpush3.bf16.msra.mxu0 %v1978_v8 }
 0x214   :  { %1527 = vmatprep.subr.bf16.mxu0 %v1853_v0 }
 0x2c9   :  { %v305_v61 = vpop.f32.mrb[4].mxu0 }
 0x2ca   :  { %v311_v62 = vadd.f32 %v1207_v60, %v305_v61  ;;  %v1465_v63 = vpop.f32.mrb[5].mxu0 }
 0x2cb   :  { %v308_v9 = vpop.f32.mrb[6].mxu0 }
 0x2cc   :  { %v318_v12 = vmul.f32 %v2028_v22, %v311_v62  ;;  %v1466_v14 = vpop.f32.mrb[7].mxu0  ;;  %v1219_v9 = vld [vmem:[%s2462_s0 + $0x28] sm:$0xff] }
 0x2ce   :  { %v319_v15 = vadd.f32 %v318_v12, %v317_v10 }
 0x2d0   :  { %v321_v16 = vsub.f32 %v319_v15, %v320_v59 }
 0x2d2   :  { %327 = vst [vmem:[#allocation5 + $0x10] sm:$0xff] %v321_v16  ;;  %v322_v17 = vsub.f32 %v321_v16, %v316_v58  ;;  %v379_v32 = vmul.f32 %v2020_v19, %v321_v16 }
 0x2d4   :  { %vm323_vm5 = vcmp.gt.f32.partialorder %v322_v17, 0.0 }
 0x2d5   :  { %v1210_v18 = vsel %vm323_vm5, 1.0, %v1853_v0  ;;  %vm1212_vm6 = vmpackc.low %vm323_vm5, %vm323_vm5 }
 0x2d6   :  { %329 = vst [vmem:[#allocation6 + $0x10] sm:$0xff] %v1210_v18  ;;  %1484 = vmatmul.mubr.msk.bf16.vlgmr.msra.gmra.mrb[4].mxu1 %vm1212_vm6, %v1855_v36  ;;  %v375_v21 = vmul.f32 %v1210_v18, %v2008_v11 }
 0x2d7   :  { %1508 = vmatpush3.bf16.msra.mxu1 %v1918_v1  ;;  %1523 = vmatprep.mubr.msk.bf16.mxu1 %vm1854_vm0, %v1853_v0 }
 0x2d8   :  { %v376_v23 = vadd.f32 %v375_v21, %v374_v20  ;;  %1509 = vmatprep.subr.bf16.mxu1 %v1853_v0 }
 0x2da   :  { %v377_v24 = vmul.f32 1.8, %v376_v23  ;;  %v436_v40 = vmul.f32 %v2013_v13, %v376_v23 }
 0x2db   :  { %1510 = vmatpush3.bf16.msra.mxu1 %v1924_v2 }
 0x2dc   :  { %v378_v25 = vadd.f32 0.01, %v377_v24  ;;  %1511 = vmatprep.subr.bf16.mxu1 %v1853_v0 }
 0x2de   :  { %v382_v26 = vmul.f32 %v1210_v18, %v378_v25 }
 0x2df   :  { %1512 = vmatpush3.bf16.msra.mxu1 %v1933_v3 }
 0x2e0   :  { %1513 = vmatprep.subr.bf16.mxu1 %v1853_v0 }
 0x2e3   :  { %1514 = vmatpush3.bf16.msra.mxu1 %v1942_v4 }
 0x2e4   :  { %1515 = vmatprep.subr.bf16.mxu1 %v1853_v0 }
 0x2e7   :  { %1516 = vmatpush3.bf16.msra.mxu1 %v1951_v5 }
 0x2e8   :  { %1517 = vmatprep.subr.bf16.mxu1 %v1853_v0 }
 0x2eb   :  { %1518 = vmatpush3.bf16.msra.mxu1 %v1960_v6 }
 0x2ec   :  { %1519 = vmatprep.subr.bf16.mxu1 %v1853_v0 }
 0x2ef   :  { %1520 = vmatpush3.bf16.msra.mxu1 %v1969_v7 }
 0x2f0   :  { %1521 = vmatprep.subr.bf16.mxu1 %v1853_v0 }
 0x2f3   :  { %1522 = vmatpush3.bf16.msra.mxu1 %v1978_v8 }
 0x2f4   :  { %1547 = vmatprep.subr.bf16.mxu1 %v1853_v0 }
 0x3a9   :  { %v367_v28 = vpop.f32.mrb[4].mxu1 }
 0x3aa   :  { %v373_v29 = vadd.f32 %v1211_v27, %v367_v28  ;;  %v1485_v30 = vpop.f32.mrb[5].mxu1 }
 0x3ab   :  { %v370_v31 = vpop.f32.mrb[6].mxu1 }
 0x3ac   :  { %v380_v33 = vmul.f32 %v2028_v22, %v373_v29  ;;  %v1486_v34 = vpop.f32.mrb[7].mxu1  ;;  %v1223_v31 = vld [vmem:[%s2462_s0 + $0x30] sm:$0xff] }
 0x3ae   :  { %v381_v35 = vadd.f32 %v380_v33, %v379_v32 }
 0x3b0   :  { %v383_v37 = vsub.f32 %v381_v35, %v382_v26 }
 0x3b2   :  { %389 = vst [vmem:[#allocation5 + $0x18] sm:$0xff] %v383_v37  ;;  %v384_v38 = vsub.f32 %v383_v37, %v378_v25  ;;  %v441_v51 = vmul.f32 %v2020_v19, %v383_v37 }
 0x3b4   :  { %vm385_vm7 = vcmp.gt.f32.partialorder %v384_v38, 0.0 }
 0x3b5   :  { %v1214_v39 = vsel %vm385_vm7, 1.0, %v1853_v0  ;;  %vm1216_vm8 = vmpackc.low %vm385_vm7, %vm385_vm7 }
 0x3b6   :  { %391 = vst [vmem:[#allocation6 + $0x18] sm:$0xff] %v1214_v39  ;;  %1504 = vmatmul.mubr.msk.bf16.vlgmr.msra.gmra.mrb[8].mxu0 %vm1216_vm8, %v1855_v36  ;;  %v437_v41 = vmul.f32 %v1214_v39, %v2008_v11 }
 0x3b7   :  { %1528 = vmatpush3.bf16.msra.mxu0 %v1918_v1  ;;  %1543 = vmatprep.mubr.msk.bf16.mxu0 %vm1854_vm0, %v1853_v0 }
 0x3b8   :  { %v438_v42 = vadd.f32 %v437_v41, %v436_v40  ;;  %1529 = vmatprep.subr.bf16.mxu0 %v1853_v0 }
 0x3ba   :  { %v439_v43 = vmul.f32 1.8, %v438_v42  ;;  %v498_v58 = vmul.f32 %v2013_v13, %v438_v42 }
 0x3bb   :  { %1530 = vmatpush3.bf16.msra.mxu0 %v1924_v2 }
 0x3bc   :  { %v440_v44 = vadd.f32 0.01, %v439_v43  ;;  %1531 = vmatprep.subr.bf16.mxu0 %v1853_v0 }
 0x3be   :  { %v444_v45 = vmul.f32 %v1214_v39, %v440_v44 }
 0x3bf   :  { %1532 = vmatpush3.bf16.msra.mxu0 %v1933_v3 }
 0x3c0   :  { %1533 = vmatprep.subr.bf16.mxu0 %v1853_v0 }
 0x3c3   :  { %1534 = vmatpush3.bf16.msra.mxu0 %v1942_v4 }
 0x3c4   :  { %1535 = vmatprep.subr.bf16.mxu0 %v1853_v0 }
 0x3c7   :  { %1536 = vmatpush3.bf16.msra.mxu0 %v1951_v5 }
 0x3c8   :  { %1537 = vmatprep.subr.bf16.mxu0 %v1853_v0 }
 0x3cb   :  { %1538 = vmatpush3.bf16.msra.mxu0 %v1960_v6 }
 0x3cc   :  { %1539 = vmatprep.subr.bf16.mxu0 %v1853_v0 }
 0x3cf   :  { %1540 = vmatpush3.bf16.msra.mxu0 %v1969_v7 }
 0x3d0   :  { %1541 = vmatprep.subr.bf16.mxu0 %v1853_v0 }
 0x3d3   :  { %1542 = vmatpush3.bf16.msra.mxu0 %v1978_v8 }
 0x3d4   :  { %1567 = vmatprep.subr.bf16.mxu0 %v1853_v0 }
 0x489   :  { %v429_v47 = vpop.f32.mrb[8].mxu0 }
 0x48a   :  { %v435_v48 = vadd.f32 %v1215_v46, %v429_v47  ;;  %v1505_v49 = vpop.f32.mrb[9].mxu0 }
 0x48b   :  { %v432_v50 = vpop.f32.mrb[10].mxu0 }
 0x48c   :  { %v442_v52 = vmul.f32 %v2028_v22, %v435_v48  ;;  %v1506_v53 = vpop.f32.mrb[11].mxu0  ;;  %v1227_v50 = vld [vmem:[%s2462_s0 + $0x38] sm:$0xff] }
 0x48e   :  { %v443_v54 = vadd.f32 %v442_v52, %v441_v51 }
 0x490   :  { %v445_v55 = vsub.f32 %v443_v54, %v444_v45 }
 0x492   :  { %451 = vst [vmem:[#allocation5 + $0x20] sm:$0xff] %v445_v55  ;;  %v446_v56 = vsub.f32 %v445_v55, %v440_v44  ;;  %v503_v16 = vmul.f32 %v2020_v19, %v445_v55 }
 0x494   :  { %vm447_vm9 = vcmp.gt.f32.partialorder %v446_v56, 0.0 }
 0x495   :  { %v1218_v57 = vsel %vm447_vm9, 1.0, %v1853_v0  ;;  %vm1220_vm10 = vmpackc.low %vm447_vm9, %vm447_vm9 }
 0x496   :  { %453 = vst [vmem:[#allocation6 + $0x20] sm:$0xff] %v1218_v57  ;;  %1524 = vmatmul.mubr.msk.bf16.vlgmr.msra.gmra.mrb[8].mxu1 %vm1220_vm10, %v1855_v36  ;;  %v499_v59 = vmul.f32 %v1218_v57, %v2008_v11 }
 0x497   :  { %1548 = vmatpush3.bf16.msra.mxu1 %v1918_v1  ;;  %1563 = vmatprep.mubr.msk.bf16.mxu1 %vm1854_vm0, %v1853_v0 }
 0x498   :  { %v500_v60 = vadd.f32 %v499_v59, %v498_v58  ;;  %1549 = vmatprep.subr.bf16.mxu1 %v1853_v0 }
 0x49a   :  { %v501_v61 = vmul.f32 1.8, %v500_v60  ;;  %v560_v25 = vmul.f32 %v2013_v13, %v500_v60 }
 0x49b   :  { %1550 = vmatpush3.bf16.msra.mxu1 %v1924_v2 }
 0x49c   :  { %v502_v62 = vadd.f32 0.01, %v501_v61  ;;  %1551 = vmatprep.subr.bf16.mxu1 %v1853_v0 }
 0x49e   :  { %v506_v63 = vmul.f32 %v1218_v57, %v502_v62 }
 0x49f   :  { %1552 = vmatpush3.bf16.msra.mxu1 %v1933_v3 }
 0x4a0   :  { %1553 = vmatprep.subr.bf16.mxu1 %v1853_v0 }
 0x4a3   :  { %1554 = vmatpush3.bf16.msra.mxu1 %v1942_v4 }
 0x4a4   :  { %1555 = vmatprep.subr.bf16.mxu1 %v1853_v0 }
 0x4a7   :  { %1556 = vmatpush3.bf16.msra.mxu1 %v1951_v5 }
 0x4a8   :  { %1557 = vmatprep.subr.bf16.mxu1 %v1853_v0 }
 0x4ab   :  { %1558 = vmatpush3.bf16.msra.mxu1 %v1960_v6 }
 0x4ac   :  { %1559 = vmatprep.subr.bf16.mxu1 %v1853_v0 }
 0x4af   :  { %1560 = vmatpush3.bf16.msra.mxu1 %v1969_v7 }
 0x4b0   :  { %1561 = vmatprep.subr.bf16.mxu1 %v1853_v0 }
 0x4b3   :  { %1562 = vmatpush3.bf16.msra.mxu1 %v1978_v8 }
 0x4b4   :  { %1587 = vmatprep.subr.bf16.mxu1 %v1853_v0 }
 0x569   :  { %v491_v10 = vpop.f32.mrb[8].mxu1 }
 0x56a   :  { %v497_v12 = vadd.f32 %v1219_v9, %v491_v10  ;;  %v1525_v14 = vpop.f32.mrb[9].mxu1 }
 0x56b   :  { %v494_v15 = vpop.f32.mrb[10].mxu1 }
 0x56c   :  { %v504_v17 = vmul.f32 %v2028_v22, %v497_v12  ;;  %v1526_v18 = vpop.f32.mrb[11].mxu1  ;;  %v1231_v15 = vld [vmem:[%s2462_s0 + $0x40] sm:$0xff] }
 0x56e   :  { %v505_v20 = vadd.f32 %v504_v17, %v503_v16 }
 0x570   :  { %v507_v21 = vsub.f32 %v505_v20, %v506_v63 }
 0x572   :  { %513 = vst [vmem:[#allocation5 + $0x28] sm:$0xff] %v507_v21  ;;  %v508_v23 = vsub.f32 %v507_v21, %v502_v62  ;;  %v565_v37 = vmul.f32 %v2020_v19, %v507_v21 }
 0x574   :  { %vm509_vm11 = vcmp.gt.f32.partialorder %v508_v23, 0.0 }
 0x575   :  { %v1222_v24 = vsel %vm509_vm11, 1.0, %v1853_v0  ;;  %vm1224_vm12 = vmpackc.low %vm509_vm11, %vm509_vm11 }
 0x576   :  { %515 = vst [vmem:[#allocation6 + $0x28] sm:$0xff] %v1222_v24  ;;  %1544 = vmatmul.mubr.msk.bf16.vlgmr.msra.gmra.mrb[12].mxu0 %vm1224_vm12, %v1855_v36  ;;  %v561_v26 = vmul.f32 %v1222_v24, %v2008_v11 }
 0x577   :  { %1568 = vmatpush3.bf16.msra.mxu0 %v1918_v1  ;;  %1583 = vmatprep.mubr.msk.bf16.mxu0 %vm1854_vm0, %v1853_v0 }
 0x578   :  { %v562_v27 = vadd.f32 %v561_v26, %v560_v25  ;;  %1569 = vmatprep.subr.bf16.mxu0 %v1853_v0 }
 0x57a   :  { %v563_v28 = vmul.f32 1.8, %v562_v27  ;;  %v622_v44 = vmul.f32 %v2013_v13, %v562_v27 }
 0x57b   :  { %1570 = vmatpush3.bf16.msra.mxu0 %v1924_v2 }
 0x57c   :  { %v564_v29 = vadd.f32 0.01, %v563_v28  ;;  %1571 = vmatprep.subr.bf16.mxu0 %v1853_v0 }
 0x57e   :  { %v568_v30 = vmul.f32 %v1222_v24, %v564_v29 }
 0x57f   :  { %1572 = vmatpush3.bf16.msra.mxu0 %v1933_v3 }
 0x580   :  { %1573 = vmatprep.subr.bf16.mxu0 %v1853_v0 }
 0x583   :  { %1574 = vmatpush3.bf16.msra.mxu0 %v1942_v4 }
 0x584   :  { %1575 = vmatprep.subr.bf16.mxu0 %v1853_v0 }
 0x587   :  { %1576 = vmatpush3.bf16.msra.mxu0 %v1951_v5 }
 0x588   :  { %1577 = vmatprep.subr.bf16.mxu0 %v1853_v0 }
 0x58b   :  { %1578 = vmatpush3.bf16.msra.mxu0 %v1960_v6 }
 0x58c   :  { %1579 = vmatprep.subr.bf16.mxu0 %v1853_v0 }
 0x58f   :  { %1580 = vmatpush3.bf16.msra.mxu0 %v1969_v7 }
 0x590   :  { %1581 = vmatprep.subr.bf16.mxu0 %v1853_v0 }
 0x593   :  { %1582 = vmatpush3.bf16.msra.mxu0 %v1978_v8 }
 0x594   :  { %1607 = vmatprep.subr.bf16.mxu0 %v1853_v0 }
 0x649   :  { %v553_v32 = vpop.f32.mrb[12].mxu0 }
 0x64a   :  { %v559_v33 = vadd.f32 %v1223_v31, %v553_v32  ;;  %v1545_v34 = vpop.f32.mrb[13].mxu0 }
 0x64b   :  { %v556_v35 = vpop.f32.mrb[14].mxu0 }
 0x64c   :  { %v566_v38 = vmul.f32 %v2028_v22, %v559_v33  ;;  %v1546_v39 = vpop.f32.mrb[15].mxu0  ;;  %v1235_v35 = vld [vmem:[%s2462_s0 + $0x48] sm:$0xff] }
 0x64e   :  { %v567_v40 = vadd.f32 %v566_v38, %v565_v37 }
 0x650   :  { %v569_v41 = vsub.f32 %v567_v40, %v568_v30 }
 0x652   :  { %575 = vst [vmem:[#allocation5 + $0x30] sm:$0xff] %v569_v41  ;;  %v570_v42 = vsub.f32 %v569_v41, %v564_v29  ;;  %v627_v55 = vmul.f32 %v2020_v19, %v569_v41 }
 0x654   :  { %vm571_vm13 = vcmp.gt.f32.partialorder %v570_v42, 0.0 }
 0x655   :  { %v1226_v43 = vsel %vm571_vm13, 1.0, %v1853_v0  ;;  %vm1228_vm14 = vmpackc.low %vm571_vm13, %vm571_vm13 }
 0x656   :  { %577 = vst [vmem:[#allocation6 + $0x30] sm:$0xff] %v1226_v43  ;;  %1564 = vmatmul.mubr.msk.bf16.vlgmr.msra.gmra.mrb[12].mxu1 %vm1228_vm14, %v1855_v36  ;;  %v623_v45 = vmul.f32 %v1226_v43, %v2008_v11 }
 0x657   :  { %1588 = vmatpush3.bf16.msra.mxu1 %v1918_v1  ;;  %1603 = vmatprep.mubr.msk.bf16.mxu1 %vm1854_vm0, %v1853_v0 }
 0x658   :  { %v624_v46 = vadd.f32 %v623_v45, %v622_v44  ;;  %1589 = vmatprep.subr.bf16.mxu1 %v1853_v0 }
 0x65a   :  { %v625_v47 = vmul.f32 1.8, %v624_v46  ;;  %v684_v62 = vmul.f32 %v2013_v13, %v624_v46 }
 0x65b   :  { %1590 = vmatpush3.bf16.msra.mxu1 %v1924_v2 }
 0x65c   :  { %v626_v48 = vadd.f32 0.01, %v625_v47  ;;  %1591 = vmatprep.subr.bf16.mxu1 %v1853_v0 }
 0x65e   :  { %v630_v49 = vmul.f32 %v1226_v43, %v626_v48 }
 0x65f   :  { %1592 = vmatpush3.bf16.msra.mxu1 %v1933_v3 }
 0x660   :  { %1593 = vmatprep.subr.bf16.mxu1 %v1853_v0 }
 0x663   :  { %1594 = vmatpush3.bf16.msra.mxu1 %v1942_v4 }
 0x664   :  { %1595 = vmatprep.subr.bf16.mxu1 %v1853_v0 }
 0x667   :  { %1596 = vmatpush3.bf16.msra.mxu1 %v1951_v5 }
 0x668   :  { %1597 = vmatprep.subr.bf16.mxu1 %v1853_v0 }
 0x66b   :  { %1598 = vmatpush3.bf16.msra.mxu1 %v1960_v6 }
 0x66c   :  { %1599 = vmatprep.subr.bf16.mxu1 %v1853_v0 }
 0x66f   :  { %1600 = vmatpush3.bf16.msra.mxu1 %v1969_v7 }
 0x670   :  { %1601 = vmatprep.subr.bf16.mxu1 %v1853_v0 }
 0x673   :  { %1602 = vmatpush3.bf16.msra.mxu1 %v1978_v8 }
 0x674   :  { %1627 = vmatprep.subr.bf16.mxu1 %v1853_v0 }
 0x729   :  { %v615_v51 = vpop.f32.mrb[12].mxu1 }
 0x72a   :  { %v621_v52 = vadd.f32 %v1227_v50, %v615_v51  ;;  %v1565_v53 = vpop.f32.mrb[13].mxu1 }
 0x72b   :  { %v618_v54 = vpop.f32.mrb[14].mxu1 }
 0x72c   :  { %v628_v56 = vmul.f32 %v2028_v22, %v621_v52  ;;  %v1566_v57 = vpop.f32.mrb[15].mxu1  ;;  %v1239_v54 = vld [vmem:[%s2462_s0 + $0x50] sm:$0xff] }
 0x72e   :  { %v629_v58 = vadd.f32 %v628_v56, %v627_v55 }
 0x730   :  { %v631_v59 = vsub.f32 %v629_v58, %v630_v49 }
 0x732   :  { %637 = vst [vmem:[#allocation5 + $0x38] sm:$0xff] %v631_v59  ;;  %v632_v60 = vsub.f32 %v631_v59, %v626_v48  ;;  %v689_v21 = vmul.f32 %v2020_v19, %v631_v59 }
 0x734   :  { %vm633_vm15 = vcmp.gt.f32.partialorder %v632_v60, 0.0 }
 0x735   :  { %v1230_v61 = vsel %vm633_vm15, 1.0, %v1853_v0  ;;  %vm1232_vm1 = vmpackc.low %vm633_vm15, %vm633_vm15 }
 0x736   :  { %639 = vst [vmem:[#allocation6 + $0x38] sm:$0xff] %v1230_v61  ;;  %1584 = vmatmul.mubr.msk.bf16.vlgmr.msra.gmra.mrb[16].mxu0 %vm1232_vm1, %v1855_v36  ;;  %v685_v63 = vmul.f32 %v1230_v61, %v2008_v11 }
 0x737   :  { %1608 = vmatpush3.bf16.msra.mxu0 %v1918_v1  ;;  %1623 = vmatprep.mubr.msk.bf16.mxu0 %vm1854_vm0, %v1853_v0 }
 0x738   :  { %v686_v9 = vadd.f32 %v685_v63, %v684_v62  ;;  %1609 = vmatprep.subr.bf16.mxu0 %v1853_v0 }
 0x73a   :  { %v687_v10 = vmul.f32 1.8, %v686_v9  ;;  %v746_v29 = vmul.f32 %v2013_v13, %v686_v9 }
 0x73b   :  { %1610 = vmatpush3.bf16.msra.mxu0 %v1924_v2 }
 0x73c   :  { %v688_v12 = vadd.f32 0.01, %v687_v10  ;;  %1611 = vmatprep.subr.bf16.mxu0 %v1853_v0 }
 0x73e   :  { %v692_v14 = vmul.f32 %v1230_v61, %v688_v12 }
 0x73f   :  { %1612 = vmatpush3.bf16.msra.mxu0 %v1933_v3 }
 0x740   :  { %1613 = vmatprep.subr.bf16.mxu0 %v1853_v0 }
 0x743   :  { %1614 = vmatpush3.bf16.msra.mxu0 %v1942_v4 }
 0x744   :  { %1615 = vmatprep.subr.bf16.mxu0 %v1853_v0 }
 0x747   :  { %1616 = vmatpush3.bf16.msra.mxu0 %v1951_v5 }
 0x748   :  { %1617 = vmatprep.subr.bf16.mxu0 %v1853_v0 }
 0x74b   :  { %1618 = vmatpush3.bf16.msra.mxu0 %v1960_v6 }
 0x74c   :  { %1619 = vmatprep.subr.bf16.mxu0 %v1853_v0 }
 0x74f   :  { %1620 = vmatpush3.bf16.msra.mxu0 %v1969_v7 }
 0x750   :  { %1621 = vmatprep.subr.bf16.mxu0 %v1853_v0 }
 0x753   :  { %1622 = vmatpush3.bf16.msra.mxu0 %v1978_v8 }
 0x754   :  { %1647 = vmatprep.subr.bf16.mxu0 %v1853_v0 }
 0x809   :  { %v677_v16 = vpop.f32.mrb[16].mxu0 }
 0x80a   :  { %v683_v17 = vadd.f32 %v1231_v15, %v677_v16  ;;  %v1585_v18 = vpop.f32.mrb[17].mxu0 }
 0x80b   :  { %v680_v20 = vpop.f32.mrb[18].mxu0 }
 0x80c   :  { %v690_v23 = vmul.f32 %v2028_v22, %v683_v17  ;;  %v1586_v24 = vpop.f32.mrb[19].mxu0 }
 0x80e   :  { %v691_v25 = vadd.f32 %v690_v23, %v689_v21 }
 0x810   :  { %v693_v26 = vsub.f32 %v691_v25, %v692_v14 }
 0x812   :  { %699 = vst [vmem:[#allocation5 + $0x40] sm:$0xff] %v693_v26  ;;  %v694_v27 = vsub.f32 %v693_v26, %v688_v12  ;;  %v751_v41 = vmul.f32 %v2020_v19, %v693_v26 }
 0x814   :  { %vm695_vm2 = vcmp.gt.f32.partialorder %v694_v27, 0.0  ;;  %v1744_v27 = vld [vmem:[%s2464_s2] sm:$0xff]  }
 0x815   :  { %v1234_v28 = vsel %vm695_vm2, 1.0, %v1853_v0  ;;  %vm1236_vm3 = vmpackc.low %vm695_vm2, %vm695_vm2 }
 0x816   :  { %701 = vst [vmem:[#allocation6 + $0x40] sm:$0xff] %v1234_v28  ;;  %1604 = vmatmul.mubr.msk.bf16.vlgmr.msra.gmra.mrb[16].mxu1 %vm1236_vm3, %v1855_v36  ;;  %v747_v30 = vmul.f32 %v1234_v28, %v2008_v11 }
 0x817   :  { %1628 = vmatpush3.bf16.msra.mxu1 %v1918_v1  ;;  %1643 = vmatprep.mubr.msk.bf16.mxu1 %vm1854_vm0, %v1853_v0 }
 0x818   :  { %v748_v31 = vadd.f32 %v747_v30, %v746_v29  ;;  %1629 = vmatprep.subr.bf16.mxu1 %v1853_v0  ;;  %v1745_v30 = vld [vmem:[%s2464_s2 + $0x8] sm:$0xff]  }
 0x81a   :  { %v749_v32 = vmul.f32 1.8, %v748_v31  ;;  %v808_v48 = vmul.f32 %v2013_v13, %v748_v31 }
 0x81b   :  { %1630 = vmatpush3.bf16.msra.mxu1 %v1924_v2 }
 0x81c   :  { %v750_v33 = vadd.f32 0.01, %v749_v32  ;;  %1631 = vmatprep.subr.bf16.mxu1 %v1853_v0 }
 0x81e   :  { %v754_v34 = vmul.f32 %v1234_v28, %v750_v33 }
 0x81f   :  { %1632 = vmatpush3.bf16.msra.mxu1 %v1933_v3 }
 0x820   :  { %1633 = vmatprep.subr.bf16.mxu1 %v1853_v0 }
 0x823   :  { %1634 = vmatpush3.bf16.msra.mxu1 %v1942_v4 }
 0x824   :  { %1635 = vmatprep.subr.bf16.mxu1 %v1853_v0 }
 0x827   :  { %1636 = vmatpush3.bf16.msra.mxu1 %v1951_v5 }
 0x828   :  { %1637 = vmatprep.subr.bf16.mxu1 %v1853_v0 }
 0x82b   :  { %1638 = vmatpush3.bf16.msra.mxu1 %v1960_v6 }
 0x82c   :  { %1639 = vmatprep.subr.bf16.mxu1 %v1853_v0 }
 0x82f   :  { %1640 = vmatpush3.bf16.msra.mxu1 %v1969_v7 }
 0x830   :  { %1641 = vmatprep.subr.bf16.mxu1 %v1853_v0 }
 0x833   :  { %1642 = vmatpush3.bf16.msra.mxu1 %v1978_v8 }
 0x834   :  { %1667 = vmatprep.subr.bf16.mxu1 %v1853_v0 }
 0x8e9   :  { %v739_v37 = vpop.f32.mrb[16].mxu1 }
 0x8ea   :  { %v745_v38 = vadd.f32 %v1235_v35, %v739_v37  ;;  %v1605_v39 = vpop.f32.mrb[17].mxu1  ;;  %v1748_v35 = vld [vmem:[%s2464_s2 + $0x20] sm:$0xff]   ;;  %v1749_v37 = vld [vmem:[%s2464_s2 + $0x28] sm:$0xff]  }
 0x8eb   :  { %v742_v40 = vpop.f32.mrb[18].mxu1  ;;  %v1751_v39 = vld [vmem:[%s2464_s2 + $0x38] sm:$0xff]  }
 0x8ec   :  { %v752_v42 = vmul.f32 %v2028_v22, %v745_v38  ;;  %v1606_v43 = vpop.f32.mrb[19].mxu1  ;;  %v1750_v38 = vld [vmem:[%s2464_s2 + $0x30] sm:$0xff]   ;;  %v1247_v40 = vld [vmem:[%s2462_s0 + $0x60] sm:$0xff] }
 0x8ee   :  { %v753_v44 = vadd.f32 %v752_v42, %v751_v41 }
 0x8f0   :  { %v755_v45 = vsub.f32 %v753_v44, %v754_v34  ;;  %v1747_v34 = vld [vmem:[%s2464_s2 + $0x18] sm:$0xff]  }
 0x8f2   :  { %761 = vst [vmem:[#allocation5 + $0x48] sm:$0xff] %v755_v45  ;;  %v756_v46 = vsub.f32 %v755_v45, %v750_v33  ;;  %v813_v59 = vmul.f32 %v2020_v19, %v755_v45  ;;  %v1746_v33 = vld [vmem:[%s2464_s2 + $0x10] sm:$0xff]  }
 0x8f4   :  { %vm757_vm4 = vcmp.gt.f32.partialorder %v756_v46, 0.0 }
 0x8f5   :  { %v1238_v47 = vsel %vm757_vm4, 1.0, %v1853_v0  ;;  %vm1240_vm5 = vmpackc.low %vm757_vm4, %vm757_vm4 }
 0x8f6   :  { %763 = vst [vmem:[#allocation6 + $0x48] sm:$0xff] %v1238_v47  ;;  %1624 = vmatmul.mubr.msk.bf16.vlgmr.msra.gmra.mrb[20].mxu0 %vm1240_vm5, %v1855_v36  ;;  %v809_v49 = vmul.f32 %v1238_v47, %v2008_v11 }
 0x8f7   :  { %1648 = vmatpush3.bf16.msra.mxu0 %v1918_v1  ;;  %1663 = vmatprep.mubr.msk.bf16.mxu0 %vm1854_vm0, %v1853_v0 }
 0x8f8   :  { %v810_v50 = vadd.f32 %v809_v49, %v808_v48  ;;  %1649 = vmatprep.subr.bf16.mxu0 %v1853_v0 }
 0x8fa   :  { %v811_v51 = vmul.f32 1.8, %v810_v50  ;;  %v870_v12 = vmul.f32 %v2013_v13, %v810_v50 }
 0x8fb   :  { %1650 = vmatpush3.bf16.msra.mxu0 %v1924_v2 }
 0x8fc   :  { %v812_v52 = vadd.f32 0.01, %v811_v51  ;;  %1651 = vmatprep.subr.bf16.mxu0 %v1853_v0 }
 0x8fe   :  { %v816_v53 = vmul.f32 %v1238_v47, %v812_v52 }
 0x8ff   :  { %1652 = vmatpush3.bf16.msra.mxu0 %v1933_v3 }
 0x900   :  { %1653 = vmatprep.subr.bf16.mxu0 %v1853_v0 }
 0x903   :  { %1654 = vmatpush3.bf16.msra.mxu0 %v1942_v4 }
 0x904   :  { %1655 = vmatprep.subr.bf16.mxu0 %v1853_v0 }
 0x907   :  { %1656 = vmatpush3.bf16.msra.mxu0 %v1951_v5 }
 0x908   :  { %1657 = vmatprep.subr.bf16.mxu0 %v1853_v0 }
 0x90b   :  { %1658 = vmatpush3.bf16.msra.mxu0 %v1960_v6 }
 0x90c   :  { %1659 = vmatprep.subr.bf16.mxu0 %v1853_v0 }
 0x90f   :  { %1660 = vmatpush3.bf16.msra.mxu0 %v1969_v7 }
 0x910   :  { %1661 = vmatprep.subr.bf16.mxu0 %v1853_v0 }
 0x913   :  { %1662 = vmatpush3.bf16.msra.mxu0 %v1978_v8 }
 0x914   :  { %1687 = vmatprep.subr.bf16.mxu0 %v1853_v0 }
 0x9c9   :  { %v801_v55 = vpop.f32.mrb[20].mxu0 }
 0x9ca   :  { %v807_v56 = vadd.f32 %v1239_v54, %v801_v55  ;;  %v1625_v57 = vpop.f32.mrb[21].mxu0 }
 0x9cb   :  { %v804_v58 = vpop.f32.mrb[22].mxu0 }
 0x9cc   :  { %v814_v60 = vmul.f32 %v2028_v22, %v807_v56  ;;  %v1626_v61 = vpop.f32.mrb[23].mxu0 }
 0x9cd   :  { %v1753_v61 = vld [vmem:[%s2465_s3 + $0x1] ss:$0 sm:$0xff] }
 0x9ce   :  { %v815_v62 = vadd.f32 %v814_v60, %v813_v59  ;;  %v1752_v59 = vld [vmem:[%s2465_s3] ss:$0 sm:$0xff] }
 0x9d0   :  { %v817_v63 = vsub.f32 %v815_v62, %v816_v53 }
 0x9d2   :  { %823 = vst [vmem:[#allocation5 + $0x50] sm:$0xff] %v817_v63  ;;  %v818_v9 = vsub.f32 %v817_v63, %v812_v52 }
 0x9d4   :  { %vm819_vm6 = vcmp.gt.f32.partialorder %v818_v9, 0.0 }
 0x9d5   :  { %v1242_v10 = vsel %vm819_vm6, 1.0, %v1853_v0  ;;  %vm1244_vm7 = vmpackc.low %vm819_vm6, %vm819_vm6 }
 0x9d6   :  { %825 = vst [vmem:[#allocation6 + $0x50] sm:$0xff] %v1242_v10  ;;  %1644 = vmatmul.mubr.msk.bf16.vlgmr.msra.gmra.mrb[20].mxu1 %vm1244_vm7, %v1855_v36  ;;  %v871_v14 = vmul.f32 %v1242_v10, %v2008_v11 }
 0x9d7   :  { %1668 = vmatpush3.bf16.msra.mxu1 %v1918_v1  ;;  %1683 = vmatprep.mubr.msk.bf16.mxu1 %vm1854_vm0, %v1853_v0  ;;  %v1243_v1 = vld [vmem:[%s2462_s0 + $0x58] sm:$0xff] }
 0x9d8   :  { %v872_v15 = vadd.f32 %v871_v14, %v870_v12  ;;  %1669 = vmatprep.subr.bf16.mxu1 %v1853_v0 }
 0x9da   :  { %v873_v16 = vmul.f32 1.8, %v872_v15  ;;  %v932_v25 = vmul.f32 %v2013_v13, %v872_v15  ;;  %v1754_v15 = vld [vmem:[%s2465_s3 + $0x2] ss:$0 sm:$0xff] }
 0x9db   :  { %1670 = vmatpush3.bf16.msra.mxu1 %v1924_v2 }
 0x9dc   :  { %v874_v17 = vadd.f32 0.01, %v873_v16  ;;  %1671 = vmatprep.subr.bf16.mxu1 %v1853_v0 }
 0x9de   :  { %v878_v18 = vmul.f32 %v1242_v10, %v874_v17 }
 0x9df   :  { %1672 = vmatpush3.bf16.msra.mxu1 %v1933_v3 }
 0x9e0   :  { %1673 = vmatprep.subr.bf16.mxu1 %v1853_v0 }
 0x9e3   :  { %1674 = vmatpush3.bf16.msra.mxu1 %v1942_v4 }
 0x9e4   :  { %1675 = vmatprep.subr.bf16.mxu1 %v1853_v0 }
 0x9e7   :  { %1676 = vmatpush3.bf16.msra.mxu1 %v1951_v5 }
 0x9e8   :  { %1677 = vmatprep.subr.bf16.mxu1 %v1853_v0 }
 0x9eb   :  { %1678 = vmatpush3.bf16.msra.mxu1 %v1960_v6  ;;  %v875_v6 = vmul.f32 %v2020_v19, %v817_v63 }
 0x9ec   :  { %1679 = vmatprep.subr.bf16.mxu1 %v1853_v0 }
 0x9ef   :  { %1680 = vmatpush3.bf16.msra.mxu1 %v1969_v7 }
 0x9f0   :  { %1681 = vmatprep.subr.bf16.mxu1 %v1853_v0 }
 0x9f3   :  { %1682 = vmatpush3.bf16.msra.mxu1 %v1978_v8 }
 0x9f4   :  { %1707 = vmatprep.subr.bf16.mxu1 %v1853_v0 }
 0xaa9   :  { %v863_v2 = vpop.f32.mrb[20].mxu1 }
 0xaaa   :  { %v869_v3 = vadd.f32 %v1243_v1, %v863_v2  ;;  %v1645_v4 = vpop.f32.mrb[21].mxu1 }
 0xaab   :  { %v866_v5 = vpop.f32.mrb[22].mxu1 }
 0xaac   :  { %v876_v20 = vmul.f32 %v2028_v22, %v869_v3  ;;  %v1646_v21 = vpop.f32.mrb[23].mxu1  ;;  %v1255_v5 = vld [vmem:[%s2462_s0 + $0x70] sm:$0xff] }
 0xaae   :  { %v877_v7 = vadd.f32 %v876_v20, %v875_v6 }
 0xab0   :  { %v879_v23 = vsub.f32 %v877_v7, %v878_v18 }
 0xab2   :  { %885 = vst [vmem:[#allocation5 + $0x58] sm:$0xff] %v879_v23  ;;  %v880_v24 = vsub.f32 %v879_v23, %v874_v17  ;;  %v937_v45 = vmul.f32 %v2020_v19, %v879_v23  ;;  %v1755_v17 = vld [vmem:[%s2465_s3 + $0x3] ss:$0 sm:$0xff] }
 0xab4   :  { %vm881_vm8 = vcmp.gt.f32.partialorder %v880_v24, 0.0 }
 0xab5   :  { %v1246_v8 = vsel %vm881_vm8, 1.0, %v1853_v0  ;;  %vm1248_vm9 = vmpackc.low %vm881_vm8, %vm881_vm8 }
 0xab6   :  { %887 = vst [vmem:[#allocation6 + $0x58] sm:$0xff] %v1246_v8  ;;  %1664 = vmatmul.mubr.msk.bf16.vlgmr.msra.gmra.mrb[24].mxu0 %vm1248_vm9, %v1855_v36  ;;  %v933_v26 = vmul.f32 %v1246_v8, %v2008_v11 }
 0xab7   :  { %1688 = vmatpush3.bf16.msra.mxu0 %v1744_v27  ;;  %1703 = vmatprep.mubr.msk.bf16.mxu0 %vm1854_vm0, %v1853_v0 }
 0xab8   :  { %v934_v28 = vadd.f32 %v933_v26, %v932_v25  ;;  %1689 = vmatprep.subr.bf16.mxu0 %v1853_v0 }
 0xaba   :  { %v935_v29 = vmul.f32 1.8, %v934_v28  ;;  %v994_v52 = vmul.f32 %v2013_v13, %v934_v28 }
 0xabb   :  { %1690 = vmatpush3.bf16.msra.mxu0 %v1745_v30 }
 0xabc   :  { %v936_v31 = vadd.f32 0.01, %v935_v29  ;;  %1691 = vmatprep.subr.bf16.mxu0 %v1853_v0 }
 0xabe   :  { %v940_v32 = vmul.f32 %v1246_v8, %v936_v31 }
 0xabf   :  { %1692 = vmatpush3.bf16.msra.mxu0 %v1746_v33 }
 0xac0   :  { %1693 = vmatprep.subr.bf16.mxu0 %v1853_v0 }
 0xac3   :  { %1694 = vmatpush3.bf16.msra.mxu0 %v1747_v34 }
 0xac4   :  { %1695 = vmatprep.subr.bf16.mxu0 %v1853_v0 }
 0xac7   :  { %1696 = vmatpush3.bf16.msra.mxu0 %v1748_v35 }
 0xac8   :  { %1697 = vmatprep.subr.bf16.mxu0 %v1853_v0 }
 0xacb   :  { %1698 = vmatpush3.bf16.msra.mxu0 %v1749_v37 }
 0xacc   :  { %1699 = vmatprep.subr.bf16.mxu0 %v1853_v0 }
 0xacf   :  { %1700 = vmatpush3.bf16.msra.mxu0 %v1750_v38 }
 0xad0   :  { %1701 = vmatprep.subr.bf16.mxu0 %v1853_v0 }
 0xad3   :  { %1702 = vmatpush3.bf16.msra.mxu0 %v1751_v39 }
 0xb89   :  { %v925_v41 = vpop.f32.mrb[24].mxu0 }
 0xb8a   :  { %v931_v42 = vadd.f32 %v1247_v40, %v925_v41  ;;  %v1665_v43 = vpop.f32.mrb[25].mxu0 }
 0xb8b   :  { %v928_v44 = vpop.f32.mrb[26].mxu0 }
 0xb8c   :  { %v938_v46 = vmul.f32 %v2028_v22, %v931_v42  ;;  %v1666_v47 = vpop.f32.mrb[27].mxu0 }
 0xb8e   :  { %v939_v48 = vadd.f32 %v938_v46, %v937_v45 }
 0xb90   :  { %v941_v49 = vsub.f32 %v939_v48, %v940_v32 }
 0xb92   :  { %947 = vst [vmem:[#allocation5 + $0x60] sm:$0xff] %v941_v49  ;;  %v942_v50 = vsub.f32 %v941_v49, %v936_v31  ;;  %v999_v60 = vmul.f32 %v1752_v59, %v941_v49 }
 0xb94   :  { %vm943_vm10 = vcmp.gt.f32.partialorder %v942_v50, 0.0 }
 0xb95   :  { %v1250_v51 = vsel %vm943_vm10, 1.0, %v1853_v0  ;;  %vm1252_vm11 = vmpackc.low %vm943_vm10, %vm943_vm10 }
 0xb96   :  { %949 = vst [vmem:[#allocation6 + $0x60] sm:$0xff] %v1250_v51  ;;  %1684 = vmatmul.mubr.msk.bf16.vlgmr.msra.gmra.mrb[24].mxu1 %vm1252_vm11, %v1855_v36  ;;  %v995_v53 = vmul.f32 %v1250_v51, %v2008_v11  ;;  %v1251_v11 = vld [vmem:[%s2462_s0 + $0x68] sm:$0xff] }
 0xb97   :  { %1708 = vmatpush3.bf16.msra.mxu1 %v1744_v27  ;;  %1723 = vmatprep.mubr.msk.bf16.mxu1 %vm1854_vm0, %v1853_v0 }
 0xb98   :  { %v996_v19 = vadd.f32 %v995_v53, %v994_v52  ;;  %1709 = vmatprep.subr.bf16.mxu1 %v1853_v0 }
 0xb9a   :  { %v997_v22 = vmul.f32 1.8, %v996_v19  ;;  %v1056_v16 = vmul.f32 %v1754_v15, %v996_v19 }
 0xb9b   :  { %1710 = vmatpush3.bf16.msra.mxu1 %v1745_v30 }
 0xb9c   :  { %v998_v54 = vadd.f32 0.01, %v997_v22  ;;  %1711 = vmatprep.subr.bf16.mxu1 %v1853_v0 }
 0xb9e   :  { %v1002_v55 = vmul.f32 %v1250_v51, %v998_v54 }
 0xb9f   :  { %1712 = vmatpush3.bf16.msra.mxu1 %v1746_v33 }
 0xba0   :  { %1713 = vmatprep.subr.bf16.mxu1 %v1853_v0 }
 0xba3   :  { %1714 = vmatpush3.bf16.msra.mxu1 %v1747_v34 }
 0xba4   :  { %1715 = vmatprep.subr.bf16.mxu1 %v1853_v0 }
 0xba7   :  { %1716 = vmatpush3.bf16.msra.mxu1 %v1748_v35  ;;  %v1259_v35 = vld [vmem:[%s2462_s0 + $0x78] sm:$0xff]  ;;  %s1778_s0 = scalar_lea.vmem %s1145_s20, 2048 }
 0xba8   :  { %1717 = vmatprep.subr.bf16.mxu1 %v1853_v0  ;;  %p1779_p8 = scmp.ne.s32.totalorder %s1145_s20, %s1778_s0  ;;  %p1784_p10 = scmp.lt.s32.totalorder %s1778_s0, %s1778_s0 }
 0xbaa   :  { %p1785_p11 = por %p1784_p10, %p1783_p9 }
 0xbab   :  { %1718 = vmatpush3.bf16.msra.mxu1 %v1749_v37 }
 0xbac   :  { %1719 = vmatprep.subr.bf16.mxu1 %v1853_v0  ;;  %p1786_p12 = pnand %p1785_p11, %p1779_p8 }
 0xbaf   :  { %1720 = vmatpush3.bf16.msra.mxu1 %v1750_v38 }
 0xbb0   :  { %1721 = vmatprep.subr.bf16.mxu1 %v1853_v0 }
 0xbb3   :  { %1722 = vmatpush3.bf16.msra.mxu1 %v1751_v39 }
 0xc69   :  { %v987_v13 = vpop.f32.mrb[24].mxu1 }
 0xc6a   :  { %v993_v56 = vadd.f32 %v1251_v11, %v987_v13  ;;  %v1685_v57 = vpop.f32.mrb[25].mxu1 }
 0xc6b   :  { %v990_v58 = vpop.f32.mrb[26].mxu1 }
 0xc6c   :  { %v1000_v62 = vmul.f32 %v1753_v61, %v993_v56  ;;  %v1686_v63 = vpop.f32.mrb[27].mxu1 }
 0xc6e   :  { %v1001_v9 = vadd.f32 %v1000_v62, %v999_v60 }
 0xc70   :  { %v1003_v10 = vsub.f32 %v1001_v9, %v1002_v55 }
 0xc72   :  { %1009 = vst [vmem:[#allocation5 + $0x68] sm:$0xff] %v1003_v10  ;;  %v1004_v12 = vsub.f32 %v1003_v10, %v998_v54  ;;  %v1061_v23 = vmul.f32 %v1752_v59, %v1003_v10 }
 0xc74   :  { %vm1005_vm0 = vcmp.gt.f32.partialorder %v1004_v12, 0.0 }
 0xc75   :  { %v1254_v14 = vsel %vm1005_vm0, 1.0, %v1853_v0  ;;  %vm1256_vm12 = vmpackc.low %vm1005_vm0, %vm1005_vm0 }
 0xc76   :  { %1011 = vst [vmem:[#allocation6 + $0x68] sm:$0xff] %v1254_v14  ;;  %1704 = vmatmul.mubr.msk.bf16.vlgmr.msra.gmra.mrb[28].mxu0 %vm1256_vm12, %v1855_v36  ;;  %v1057_v18 = vmul.f32 %v1755_v17, %v1254_v14 }
 0xc78   :  { %v1058_v1 = vadd.f32 %v1057_v18, %v1056_v16 }
 0xc7a   :  { %v1059_v2 = vmul.f32 1.8, %v1058_v1  ;;  %v1118_v29 = vmul.f32 %v1754_v15, %v1058_v1 }
 0xc7c   :  { %v1060_v3 = vadd.f32 0.01, %v1059_v2 }
 0xc7e   :  { %v1064_v4 = vmul.f32 %v1254_v14, %v1060_v3 }
 0xd49   :  { %v1049_v6 = vpop.f32.mrb[28].mxu0 }
 0xd4a   :  { %v1055_v20 = vadd.f32 %v1255_v5, %v1049_v6  ;;  %v1705_v21 = vpop.f32.mrb[29].mxu0 }
 0xd4b   :  { %v1052_v7 = vpop.f32.mrb[30].mxu0 }
 0xd4c   :  { %v1062_v24 = vmul.f32 %v1753_v61, %v1055_v20  ;;  %v1706_v8 = vpop.f32.mrb[31].mxu0 }
 0xd4e   :  { %v1063_v25 = vadd.f32 %v1062_v24, %v1061_v23 }
 0xd50   :  { %v1065_v26 = vsub.f32 %v1063_v25, %v1064_v4 }
 0xd52   :  { %1071 = vst [vmem:[#allocation5 + $0x70] sm:$0xff] %v1065_v26  ;;  %v1066_v27 = vsub.f32 %v1065_v26, %v1060_v3  ;;  %v1123_v41 = vmul.f32 %v1752_v59, %v1065_v26 }
 0xd54   :  { %vm1067_vm13 = vcmp.gt.f32.partialorder %v1066_v27, 0.0 }
 0xd55   :  { %v1258_v28 = vsel %vm1067_vm13, 1.0, %v1853_v0  ;;  %vm1260_vm14 = vmpackc.low %vm1067_vm13, %vm1067_vm13 }
 0xd56   :  { %1073 = vst [vmem:[#allocation6 + $0x70] sm:$0xff] %v1258_v28  ;;  %1724 = vmatmul.mubr.msk.bf16.vlgmr.msra.gmra.mrb[28].mxu1 %vm1260_vm14, %v1855_v36  ;;  %v1119_v30 = vmul.f32 %v1755_v17, %v1258_v28 }
 0xd58   :  { %v1120_v31 = vadd.f32 %v1119_v30, %v1118_v29 }
 0xd5a   :  { %1138 = vst [vmem:[#allocation8 + $0x10] sm:$0xff] %v1120_v31  ;;  %v1121_v32 = vmul.f32 1.8, %v1120_v31 }
 0xd5c   :  { %v1122_v33 = vadd.f32 0.01, %v1121_v32 }
 0xd5e   :  { %v1126_v34 = vmul.f32 %v1258_v28, %v1122_v33 }
 0xe29   :  { %v1111_v37 = vpop.f32.mrb[28].mxu1 }
 0xe2a   :  { %v1117_v38 = vadd.f32 %v1259_v35, %v1111_v37  ;;  %v1725_v39 = vpop.f32.mrb[29].mxu1 }
 0xe2b   :  { %v1114_v40 = vpop.f32.mrb[30].mxu1 }
 0xe2c   :  { %v1124_v42 = vmul.f32 %v1753_v61, %v1117_v38  ;;  %v1726_v43 = vpop.f32.mrb[31].mxu1 }
 0xe2e   :  { %v1125_v36 = vadd.f32 %v1124_v42, %v1123_v41 }
 0xe30   :  { %v1127_v44 = vsub.f32 %v1125_v36, %v1126_v34 }
 0xe32   :  { %v1128_v45 = vsub.f32 %v1127_v44, %v1122_v33  ;;  %1133 = vst [vmem:[#allocation5 + $0x78] sm:$0xff] %v1127_v44  ;;  %1136 = vst [vmem:[#allocation8] sm:$0xff] %v1127_v44 }
 0xe33   :  { %1789 = shalt.err (!%p1786_p12)
}
 0xe34   :  { %s1790_s27 = scalar_lea.hbm %s2466_s4, 2048 }
 0xe35   :  { %p1791_p13 = scmp.ne.s32.totalorder %s2466_s4, %s1790_s27  ;;  %p1794_p0 = scmp.lt.u32.totalorder %s1790_s27, %s2466_s4 }
 0xe37   :  { %p1796_p1 = pnand %p1794_p0, %p1791_p13 }
 0xe39   :  { %1799 = shalt.err (!%p1796_p1)
}
 0xe3a   :  { %1150 = dma.vmem_to_hbm [thread:$0]  %s1145_s20, 2048, %s2466_s4, [#allocation4], %s1851_s7, %s1851_s7, %s1852_s8   ;;  %vm1129_vm15 = vcmp.gt.f32.partialorder %v1128_v45, 0.0 }
 0xe3b   :  { %v1262_v46 = vsel %vm1129_vm15, 1.0, %v1853_v0  ;;  %s1800_s11 = scalar_lea.vmem %s1157_s22, 2048  ;;  %p1805_p3 = scmp.lt.s32.totalorder %s1157_s22, %s1157_s22 }
 0xe3c   :  { %1135 = vst [vmem:[#allocation6 + $0x78] sm:$0xff] %v1262_v46  ;;  %1137 = vst [vmem:[#allocation8 + $0x8] sm:$0xff] %v1262_v46  ;;  %p1801_p2 = scmp.ne.s32.totalorder %s1157_s22, %s1800_s11  ;;  %p1806_p4 = scmp.lt.s32.totalorder %s1800_s11, %s1800_s11 }
 0xe3e   :  { %p1807_p5 = por %p1806_p4, %p1805_p3 }
 0xe40   :  { %p1808_p6 = pnand %p1807_p5, %p1801_p2 }
 0xe42   :  { %1811 = shalt.err (!%p1808_p6)
}
 0xe43   :  { %s1812_s13 = scalar_lea.hbm %s2467_s5, 2048 }
 0xe44   :  { %p1813_p7 = scmp.ne.s32.totalorder %s2467_s5, %s1812_s13  ;;  %p1816_p8 = scmp.lt.u32.totalorder %s1812_s13, %s2467_s5 }
 0xe46   :  { %p1818_p9 = pnand %p1816_p8, %p1813_p7 }
 0xe48   :  { %1821 = shalt.err (!%p1818_p9)
}
 0xe49   :  { %1162 = dma.vmem_to_hbm [thread:$0]  %s1157_s22, 2048, %s2467_s5, [#allocation7], %s1851_s7, %s1851_s7, %s1852_s8  }
 0xe4a   :  { %s1822_s18 = scalar_lea.vmem %s2425_s24, 384  ;;  %p1827_p11 = scmp.lt.s32.totalorder %s2425_s24, %s2425_s24 }
 0xe4b   :  { %p1823_p10 = scmp.ne.s32.totalorder %s2425_s24, %s1822_s18  ;;  %p1828_p12 = scmp.lt.s32.totalorder %s1822_s18, %s1822_s18 }
 0xe4d   :  { %p1829_p13 = por %p1828_p12, %p1827_p11 }
 0xe4f   :  { %p1830_p0 = pnand %p1829_p13, %p1823_p10 }
 0xe51   :  { %1833 = shalt.err (!%p1830_p0)
}
 0xe52   :  { %s1834_s21 = scalar_lea.hbm %s2468_s6, 384 }
 0xe53   :  { %p1835_p1 = scmp.ne.s32.totalorder %s2468_s6, %s1834_s21  ;;  %p1838_p2 = scmp.lt.u32.totalorder %s1834_s21, %s2468_s6 }
 0xe55   :  { %p1840_p3 = pnand %p1838_p2, %p1835_p1 }
 0xe57   :  { %1843 = shalt.err (!%p1840_p3)
}
 0xe58   :  { %1174 = dma.vmem_to_hbm [thread:$0]  %s2425_s24, 384, %s2468_s6, [#allocation7], %s1851_s7, %s1851_s7, %s1852_s8  }
 0xe59   :  { %1846 = dma.done.wait [#allocation4], 2048  }
 0xe5a   :  { %1847 = vsyncadd [#allocation4], 4294965248 }
 0xe5b   :  { %1848 = dma.done.wait [#allocation7], 2432  }
 0xe5c   :  { %1849 = vsyncadd [#allocation7], 4294964864 }
 0xe5d   :  { %1184 = vsyncpa [#allocation3], 1 }
 0xe5e   :  { %1185 = vsyncpa [#allocation4], 1 }
 0xe5f   :  { %1186 = vsyncpa [#allocation7], 1 }

</bundles_post_ra>
